<compile_context>
chip_gen: v7x
topology: tpu7x:2x2x1
jax: 0.10.0
libtpu: 0.0.40
codegen_flags: <defaults>
</compile_context>

<pallas_src>
import jax
import jax.numpy as jnp
from jax import lax
from jax.experimental import pallas as pl
from jax.experimental.pallas import tpu as pltpu


# ----------------------------------------------------------------------------
# Fused Pallas kernel: conv-as-matmul + ReLU + 2-layer LSTM + FC head
# ----------------------------------------------------------------------------
def _fused_cnn_lstm_kernel(p_ref, wc_ref, hc_ref, ws_ref, wr_ref, out_ref):
    T = wc_ref.shape[0]            # conv out channels == timesteps
    _, B, Hd = hc_ref.shape        # hc = [h layer0, h layer1, c layer0, c layer1]
    BHW = p_ref.shape[1]
    In = BHW // B                  # H*W per batch element (256, lane aligned)
    f32 = jnp.float32
    bf16 = jnp.bfloat16

    # --- CNN encoder: bias folded in via the ones-row of p; lane-dense output
    enc = jnp.maximum(
        jnp.dot(wc_ref[...], p_ref[...], preferred_element_type=f32), 0.0)
    # enc: (T, B*In), already time-major for the LSTM.

    # --- Hoisted layer-1 input projection (the only K=256 matmuls), done once
    #     outside the serial recurrence and combined ONCE into (T, B, 4H) so
    #     the time loop needs only static slices (no per-step concats).
    wih0 = ws_ref[0:In, :]                         # (In, 4H)  f32
    b0 = ws_ref[In:In + 1, :]                      # (1, 4H)
    gx_all = jnp.stack(
        [jnp.dot(enc[:, b * In:(b + 1) * In], wih0,
                 preferred_element_type=f32) + b0
         for b in range(B)], axis=1)               # (T, B, 4H)

    b1 = ws_ref[In + 1:In + 2, :]                  # (1, 4H)
    whh0 = wr_ref[0:Hd, :]                         # (Hd, 4H)   bf16
    w_l2 = wr_ref[Hd:3 * Hd, :]                    # (2Hd, 4H)  bf16 = [wih1; whh1]

    def lstm_gates(g, c):
        # One sigmoid + one tanh over the full (B, 4H) pre-activation vreg
        # (2 EUP pushes instead of 4), then cheap 32-lane slices.  f32 math.
        sg = jax.nn.sigmoid(g)
        tg = jnp.tanh(g)
        i = sg[:, 0 * Hd:1 * Hd]
        f = sg[:, 1 * Hd:2 * Hd]
        o = sg[:, 3 * Hd:4 * Hd]
        gg = tg[:, 2 * Hd:3 * Hd]
        c_new = f * c + i * gg
        return o * jnp.tanh(c_new), c_new

    h1, h2 = hc_ref[0], hc_ref[1]
    c1, c2 = hc_ref[2], hc_ref[3]

    # --- T=8 recurrence, fully unrolled; states (B, Hd) live in vregs.
    #     Recurrent dots use bf16 operands (single MXU pass) with f32 accum.
    for t in range(T):
        g1 = gx_all[t] + jnp.dot(h1.astype(bf16), whh0,
                                 preferred_element_type=f32)
        h1, c1 = lstm_gates(g1, c1)
        # inter-layer LSTM dropout is identity in eval mode
        h12 = jnp.concatenate([h1, h2], axis=1).astype(bf16)   # (B, 2Hd)
        g2 = jnp.dot(h12, w_l2, preferred_element_type=f32) + b1
        h2, c2 = lstm_gates(g2, c2)

    # post-LSTM dropout is identity in eval mode; lane-dense padded FC head
    wfc = ws_ref[In + 8:In + 8 + Hd, :]            # (Hd, 4H) f32, cols>=2 are 0
    bfc = ws_ref[In + 2:In + 3, :]                 # (1, 4H)
    out_ref[...] = jnp.dot(h2, wfc, preferred_element_type=f32) + bfc


# ----------------------------------------------------------------------------
# Full CNNLSTM forward (wrapper: im2col glue + weight slab packing)
# ----------------------------------------------------------------------------
def cnn_lstm_forward(x, hidden, params):
    """x: (B, C, H, W) NCHW; hidden: (h0, c0) each (num_layers=2, B, hidden)."""
    h0, c0 = hidden
    B, C, H, W = x.shape
    T = params["conv_w"].shape[0]
    Hd = h0.shape[-1]
    In = H * W
    G = 4 * Hd
    f32 = jnp.float32

    # im2col glue (plain JAX), K-major so the in-kernel matmul output is
    # lane-dense and already time-major (T, B*H*W).
    xp = jnp.pad(x, ((0, 0), (0, 0), (1, 1), (1, 1)))
    taps = [xp[:, :, kh:kh + H, kw:kw + W] for kh in range(3) for kw in range(3)]
    patches = jnp.stack(taps, axis=2)                    # (B, C, 9, H, W)
    patches = jnp.transpose(patches, (1, 2, 0, 3, 4))    # (C, 9, B, H, W)
    patches = patches.reshape(C * 9, B * In).astype(f32)
    # fold the conv bias into the matmul via a trailing ones row / bias column
    patches = jnp.concatenate([patches, jnp.ones((1, B * In), f32)], axis=0)
    wc = jnp.concatenate([params["conv_w"].reshape(T, C * 9).astype(f32),
                          params["conv_b"].reshape(T, 1).astype(f32)], axis=1)

    # --- packed weight slabs (fewer DMA descriptors) -------------------------
    # f32 slab rows: [0:In) wih0 | In b0 | In+1 b1 | In+2 bfc | pad | In+8: wfc
    b0 = (params["bih0"] + params["bhh0"]).reshape(1, G).astype(f32)
    b1 = (params["bih1"] + params["bhh1"]).reshape(1, G).astype(f32)
    wfc_pad = jnp.zeros((Hd, G), f32).at[:, :2].set(params["fc_w"].T.astype(f32))
    bfc_pad = jnp.zeros((1, G), f32).at[:, :2].set(
        params["fc_b"].reshape(1, 2).astype(f32))
    w_slab = jnp.concatenate(
        [params["wih0"].T.astype(f32), b0, b1, bfc_pad,
         jnp.zeros((5, G), f32), wfc_pad], axis=0)       # (In + 8 + Hd, 4H)

    # bf16 recurrent-weight slab [whh0; wih1; whh1] -> single-pass MXU dots
    w_rec = jnp.concatenate(
        [params["whh0"].T, params["wih1"].T, params["whh1"].T],
        axis=0).astype(jnp.bfloat16)                     # (3*Hd, 4H)

    hc0 = jnp.concatenate([h0, c0], axis=0).astype(f32)  # (2*layers, B, Hd)

    vmem = pl.BlockSpec(memory_space=pltpu.MemorySpace.VMEM)
    out = pl.pallas_call(
        _fused_cnn_lstm_kernel,
        out_shape=jax.ShapeDtypeStruct((B, G), f32),     # lane-dense (G = 128)
        in_specs=[vmem] * 5,
        out_specs=vmem,
    )(patches, wc, hc0, w_slab, w_rec)
    return out[:, :2]


# ----------------------------------------------------------------------------
# Pure-JAX reference (for correctness check)
# ----------------------------------------------------------------------------
def ref_forward(x, hidden, p):
    h0, c0 = hidden
    enc = lax.conv_general_dilated(
        x, p["conv_w"], (1, 1), ((1, 1), (1, 1)),
        dimension_numbers=("NCHW", "OIHW", "NCHW"))
    enc = jnp.maximum(enc + p["conv_b"][None, :, None, None], 0.0)
    B, T, H, W = enc.shape
    r = enc.reshape(B, T, H * W)

    def cell(h, c, x_t, wih, whh, bih, bhh):
        g = x_t @ wih.T + h @ whh.T + bih + bhh
        i, f, gg, o = jnp.split(g, 4, axis=-1)
        c = jax.nn.sigmoid(f) * c + jax.nn.sigmoid(i) * jnp.tanh(gg)
        h = jax.nn.sigmoid(o) * jnp.tanh(c)
        return h, c

    def step(carry, x_t):
        (h1, c1), (h2, c2) = carry
        h1, c1 = cell(h1, c1, x_t, p["wih0"], p["whh0"], p["bih0"], p["bhh0"])
        h2, c2 = cell(h2, c2, h1, p["wih1"], p["whh1"], p["bih1"], p["bhh1"])
        return ((h1, c1), (h2, c2)), h2

    carry0 = ((h0[0], c0[0]), (h0[1], c0[1]))
    _, hs = lax.scan(step, carry0, jnp.transpose(r, (1, 0, 2)))
    return hs[-1] @ p["fc_w"].T + p["fc_b"]


# ----------------------------------------------------------------------------
# Deterministic parameter init + demo
# ----------------------------------------------------------------------------
def init_params(key, c_in, timesteps, input_size, hidden):
    ks = jax.random.split(key, 12)
    u = lambda k, s, b: jax.random.uniform(k, s, jnp.float32, -b, b)
    kc = 1.0 / jnp.sqrt(c_in * 9.0)
    kh = 1.0 / jnp.sqrt(float(hidden))
    return {
        "conv_w": u(ks[0], (timesteps, c_in, 3, 3), kc),
        "conv_b": u(ks[1], (timesteps,), kc),
        "wih0": u(ks[2], (4 * hidden, input_size), kh),
        "whh0": u(ks[3], (4 * hidden, hidden), kh),
        "bih0": u(ks[4], (4 * hidden,), kh),
        "bhh0": u(ks[5], (4 * hidden,), kh),
        "wih1": u(ks[6], (4 * hidden, hidden), kh),
        "whh1": u(ks[7], (4 * hidden, hidden), kh),
        "bih1": u(ks[8], (4 * hidden,), kh),
        "bhh1": u(ks[9], (4 * hidden,), kh),
        "fc_w": u(ks[10], (2, hidden), kh),
        "fc_b": u(ks[11], (2,), kh),
    }


if __name__ == "__main__":
    B, C_IN, SP = 2, 4, 16           # batch, input channels, spatial
    T = 8                            # conv out channels == timesteps
    HIDDEN, NUM_LAYERS = 32, 2
    INPUT_SIZE = SP * SP             # H*W after the CNN

    key = jax.random.PRNGKey(0)
    k_x, k_p = jax.random.split(key)
    x = jax.random.normal(k_x, (B, C_IN, SP, SP), jnp.float32)
    params = init_params(k_p, C_IN, T, INPUT_SIZE, HIDDEN)

    # init_hidden(): zeros of shape (num_layers, batch, hidden)
    h0 = jnp.zeros((NUM_LAYERS, B, HIDDEN), jnp.float32)
    c0 = jnp.zeros((NUM_LAYERS, B, HIDDEN), jnp.float32)

    fwd = jax.jit(cnn_lstm_forward)
    out = jax.block_until_ready(fwd(x, (h0, c0), params))
    assert out.shape == (B, 2)

    ref = jax.block_until_ready(ref_forward(x, (h0, c0), params))
    # 5e-3 tolerance: recurrent matmuls use bf16 MXU inputs (f32 accumulation),
    # which costs ~2-3 decimal digits over the 8-step serial recurrence.
    assert jnp.allclose(out, ref, rtol=5e-3, atol=5e-3), (out, ref)

    print("KERNEL_OK")
</pallas_src>

<mosaic_0001>
module attributes {stable_mosaic.version = 11 : i64} {
  func.func @_fused_cnn_lstm_kernel(%arg0: memref<37x512xf32, #tpu.memory_space<vmem>>, %arg1: memref<8x37xf32, #tpu.memory_space<vmem>>, %arg2: memref<4x2x32xf32, #tpu.memory_space<vmem>>, %arg3: memref<296x128xf32, #tpu.memory_space<vmem>>, %arg4: memref<96x128xbf16, #tpu.memory_space<vmem>>, %arg5: memref<2x128xf32, #tpu.memory_space<vmem>>) attributes {dimension_semantics = [], scalar_prefetch = 0 : i64, scratch_operands = 0 : i64, tpu.core_type = #tpu.core_type<tc>} {
    %c0 = arith.constant 0 : index
    %c0_0 = arith.constant 0 : index
    %0 = vector.load %arg1[%c0, %c0_0] : memref<8x37xf32, #tpu.memory_space<vmem>>, vector<8x37xf32>
    %c0_1 = arith.constant 0 : index
    %c0_2 = arith.constant 0 : index
    %1 = vector.load %arg0[%c0_1, %c0_2] : memref<37x512xf32, #tpu.memory_space<vmem>>, vector<37x512xf32>
    %cst = arith.constant dense<0.000000e+00> : vector<8x512xf32>
    %2 = tpu.matmul %0, %1, %cst {dimension_numbers = #tpu.dot_dimension_numbers<[1], [0], [0], [1], [0, 0, 1, 1], [], []>} : vector<8x37xf32>, vector<37x512xf32>, vector<8x512xf32> -> vector<8x512xf32>
    %cst_3 = arith.constant 0.000000e+00 : f32
    %3 = vector.broadcast %cst_3 : f32 to vector<8x512xf32>
    %4 = arith.maximumf %2, %3 : vector<8x512xf32>
    %c0_4 = arith.constant 0 : index
    %c0_5 = arith.constant 0 : index
    %5 = vector.load %arg3[%c0_4, %c0_5] : memref<296x128xf32, #tpu.memory_space<vmem>>, vector<256x128xf32>
    %c256 = arith.constant 256 : index
    %c0_6 = arith.constant 0 : index
    %6 = vector.load %arg3[%c256, %c0_6] : memref<296x128xf32, #tpu.memory_space<vmem>>, vector<1x128xf32>
    %7 = vector.extract_strided_slice %4 {offsets = [0, 0], sizes = [8, 256], strides = [1, 1]} : vector<8x512xf32> to vector<8x256xf32>
    %cst_7 = arith.constant dense<0.000000e+00> : vector<8x128xf32>
    %8 = tpu.matmul %7, %5, %cst_7 {dimension_numbers = #tpu.dot_dimension_numbers<[1], [0], [0], [1], [0, 0, 1, 1], [], []>} : vector<8x256xf32>, vector<256x128xf32>, vector<8x128xf32> -> vector<8x128xf32>
    %9 = vector.broadcast %6 : vector<1x128xf32> to vector<8x128xf32>
    %10 = arith.addf %8, %9 : vector<8x128xf32>
    %11 = vector.extract_strided_slice %4 {offsets = [0, 256], sizes = [8, 256], strides = [1, 1]} : vector<8x512xf32> to vector<8x256xf32>
    %cst_8 = arith.constant dense<0.000000e+00> : vector<8x128xf32>
    %12 = tpu.matmul %11, %5, %cst_8 {dimension_numbers = #tpu.dot_dimension_numbers<[1], [0], [0], [1], [0, 0, 1, 1], [], []>} : vector<8x256xf32>, vector<256x128xf32>, vector<8x128xf32> -> vector<8x128xf32>
    %13 = vector.broadcast %6 : vector<1x128xf32> to vector<8x128xf32>
    %14 = arith.addf %12, %13 : vector<8x128xf32>
    %15 = vector.shape_cast %10 : vector<8x128xf32> to vector<8x1x128xf32>
    %16 = vector.shape_cast %14 : vector<8x128xf32> to vector<8x1x128xf32>
    %17 = tpu.concatenate %15, %16 in 1 : vector<8x1x128xf32>, vector<8x1x128xf32> -> vector<8x2x128xf32>
    %c257 = arith.constant 257 : index
    %c0_9 = arith.constant 0 : index
    %18 = vector.load %arg3[%c257, %c0_9] : memref<296x128xf32, #tpu.memory_space<vmem>>, vector<1x128xf32>
    %c0_10 = arith.constant 0 : index
    %c0_11 = arith.constant 0 : index
    %19 = vector.load %arg4[%c0_10, %c0_11] : memref<96x128xbf16, #tpu.memory_space<vmem>>, vector<32x128xbf16>
    %c32 = arith.constant 32 : index
    %c0_12 = arith.constant 0 : index
    %20 = vector.load %arg4[%c32, %c0_12] : memref<96x128xbf16, #tpu.memory_space<vmem>>, vector<64x128xbf16>
    %c0_13 = arith.constant 0 : index
    %c0_14 = arith.constant 0 : index
    %c0_15 = arith.constant 0 : index
    %21 = vector.load %arg2[%c0_13, %c0_14, %c0_15] : memref<4x2x32xf32, #tpu.memory_space<vmem>>, vector<1x2x32xf32>
    %22 = vector.shape_cast %21 : vector<1x2x32xf32> to vector<2x32xf32>
    %c1 = arith.constant 1 : index
    %c0_16 = arith.constant 0 : index
    %c0_17 = arith.constant 0 : index
    %23 = vector.load %arg2[%c1, %c0_16, %c0_17] : memref<4x2x32xf32, #tpu.memory_space<vmem>>, vector<1x2x32xf32>
    %24 = vector.shape_cast %23 : vector<1x2x32xf32> to vector<2x32xf32>
    %c2 = arith.constant 2 : index
    %c0_18 = arith.constant 0 : index
    %c0_19 = arith.constant 0 : index
    %25 = vector.load %arg2[%c2, %c0_18, %c0_19] : memref<4x2x32xf32, #tpu.memory_space<vmem>>, vector<1x2x32xf32>
    %26 = vector.shape_cast %25 : vector<1x2x32xf32> to vector<2x32xf32>
    %c3 = arith.constant 3 : index
    %c0_20 = arith.constant 0 : index
    %c0_21 = arith.constant 0 : index
    %27 = vector.load %arg2[%c3, %c0_20, %c0_21] : memref<4x2x32xf32, #tpu.memory_space<vmem>>, vector<1x2x32xf32>
    %28 = vector.shape_cast %27 : vector<1x2x32xf32> to vector<2x32xf32>
    %29 = vector.extract_strided_slice %17 {offsets = [0, 0, 0], sizes = [1, 2, 128], strides = [1, 1, 1]} : vector<8x2x128xf32> to vector<1x2x128xf32>
    %30 = vector.shape_cast %29 : vector<1x2x128xf32> to vector<2x128xf32>
    %31 = arith.truncf %22 : vector<2x32xf32> to vector<2x32xbf16>
    %cst_22 = arith.constant dense<0.000000e+00> : vector<2x128xf32>
    %32 = tpu.matmul %31, %19, %cst_22 {dimension_numbers = #tpu.dot_dimension_numbers<[1], [0], [0], [1], [0, 0, 1, 1], [], []>} : vector<2x32xbf16>, vector<32x128xbf16>, vector<2x128xf32> -> vector<2x128xf32>
    %33 = arith.addf %30, %32 : vector<2x128xf32>
    %34 = arith.negf %33 : vector<2x128xf32>
    %35 = math.exp %34 : vector<2x128xf32>
    %cst_23 = arith.constant 1.000000e+00 : f32
    %36 = vector.broadcast %cst_23 : f32 to vector<2x128xf32>
    %37 = arith.addf %36, %35 : vector<2x128xf32>
    %38 = arith.divf %36, %37 : vector<2x128xf32>
    %39 = math.tanh %33 : vector<2x128xf32>
    %40 = vector.extract_strided_slice %38 {offsets = [0, 0], sizes = [2, 32], strides = [1, 1]} : vector<2x128xf32> to vector<2x32xf32>
    %41 = vector.extract_strided_slice %38 {offsets = [0, 32], sizes = [2, 32], strides = [1, 1]} : vector<2x128xf32> to vector<2x32xf32>
    %42 = vector.extract_strided_slice %38 {offsets = [0, 96], sizes = [2, 32], strides = [1, 1]} : vector<2x128xf32> to vector<2x32xf32>
    %43 = vector.extract_strided_slice %39 {offsets = [0, 64], sizes = [2, 32], strides = [1, 1]} : vector<2x128xf32> to vector<2x32xf32>
    %44 = arith.mulf %41, %26 : vector<2x32xf32>
    %45 = arith.mulf %40, %43 : vector<2x32xf32>
    %46 = arith.addf %44, %45 : vector<2x32xf32>
    %47 = math.tanh %46 : vector<2x32xf32>
    %48 = arith.mulf %42, %47 : vector<2x32xf32>
    %49 = tpu.concatenate %48, %24 in 1 : vector<2x32xf32>, vector<2x32xf32> -> vector<2x64xf32>
    %50 = arith.truncf %49 : vector<2x64xf32> to vector<2x64xbf16>
    %cst_24 = arith.constant dense<0.000000e+00> : vector<2x128xf32>
    %51 = tpu.matmul %50, %20, %cst_24 {dimension_numbers = #tpu.dot_dimension_numbers<[1], [0], [0], [1], [0, 0, 1, 1], [], []>} : vector<2x64xbf16>, vector<64x128xbf16>, vector<2x128xf32> -> vector<2x128xf32>
    %52 = vector.broadcast %18 : vector<1x128xf32> to vector<2x128xf32>
    %53 = arith.addf %51, %52 : vector<2x128xf32>
    %54 = arith.negf %53 : vector<2x128xf32>
    %55 = math.exp %54 : vector<2x128xf32>
    %cst_25 = arith.constant 1.000000e+00 : f32
    %56 = vector.broadcast %cst_25 : f32 to vector<2x128xf32>
    %57 = arith.addf %56, %55 : vector<2x128xf32>
    %58 = arith.divf %56, %57 : vector<2x128xf32>
    %59 = math.tanh %53 : vector<2x128xf32>
    %60 = vector.extract_strided_slice %58 {offsets = [0, 0], sizes = [2, 32], strides = [1, 1]} : vector<2x128xf32> to vector<2x32xf32>
    %61 = vector.extract_strided_slice %58 {offsets = [0, 32], sizes = [2, 32], strides = [1, 1]} : vector<2x128xf32> to vector<2x32xf32>
    %62 = vector.extract_strided_slice %58 {offsets = [0, 96], sizes = [2, 32], strides = [1, 1]} : vector<2x128xf32> to vector<2x32xf32>
    %63 = vector.extract_strided_slice %59 {offsets = [0, 64], sizes = [2, 32], strides = [1, 1]} : vector<2x128xf32> to vector<2x32xf32>
    %64 = arith.mulf %61, %28 : vector<2x32xf32>
    %65 = arith.mulf %60, %63 : vector<2x32xf32>
    %66 = arith.addf %64, %65 : vector<2x32xf32>
    %67 = math.tanh %66 : vector<2x32xf32>
    %68 = arith.mulf %62, %67 : vector<2x32xf32>
    %69 = vector.extract_strided_slice %17 {offsets = [1, 0, 0], sizes = [1, 2, 128], strides = [1, 1, 1]} : vector<8x2x128xf32> to vector<1x2x128xf32>
    %70 = vector.shape_cast %69 : vector<1x2x128xf32> to vector<2x128xf32>
    %71 = arith.truncf %48 : vector<2x32xf32> to vector<2x32xbf16>
    %cst_26 = arith.constant dense<0.000000e+00> : vector<2x128xf32>
    %72 = tpu.matmul %71, %19, %cst_26 {dimension_numbers = #tpu.dot_dimension_numbers<[1], [0], [0], [1], [0, 0, 1, 1], [], []>} : vector<2x32xbf16>, vector<32x128xbf16>, vector<2x128xf32> -> vector<2x128xf32>
    %73 = arith.addf %70, %72 : vector<2x128xf32>
    %74 = arith.negf %73 : vector<2x128xf32>
    %75 = math.exp %74 : vector<2x128xf32>
    %cst_27 = arith.constant 1.000000e+00 : f32
    %76 = vector.broadcast %cst_27 : f32 to vector<2x128xf32>
    %77 = arith.addf %76, %75 : vector<2x128xf32>
    %78 = arith.divf %76, %77 : vector<2x128xf32>
    %79 = math.tanh %73 : vector<2x128xf32>
    %80 = vector.extract_strided_slice %78 {offsets = [0, 0], sizes = [2, 32], strides = [1, 1]} : vector<2x128xf32> to vector<2x32xf32>
    %81 = vector.extract_strided_slice %78 {offsets = [0, 32], sizes = [2, 32], strides = [1, 1]} : vector<2x128xf32> to vector<2x32xf32>
    %82 = vector.extract_strided_slice %78 {offsets = [0, 96], sizes = [2, 32], strides = [1, 1]} : vector<2x128xf32> to vector<2x32xf32>
    %83 = vector.extract_strided_slice %79 {offsets = [0, 64], sizes = [2, 32], strides = [1, 1]} : vector<2x128xf32> to vector<2x32xf32>
    %84 = arith.mulf %81, %46 : vector<2x32xf32>
    %85 = arith.mulf %80, %83 : vector<2x32xf32>
    %86 = arith.addf %84, %85 : vector<2x32xf32>
    %87 = math.tanh %86 : vector<2x32xf32>
    %88 = arith.mulf %82, %87 : vector<2x32xf32>
    %89 = tpu.concatenate %88, %68 in 1 : vector<2x32xf32>, vector<2x32xf32> -> vector<2x64xf32>
    %90 = arith.truncf %89 : vector<2x64xf32> to vector<2x64xbf16>
    %cst_28 = arith.constant dense<0.000000e+00> : vector<2x128xf32>
    %91 = tpu.matmul %90, %20, %cst_28 {dimension_numbers = #tpu.dot_dimension_numbers<[1], [0], [0], [1], [0, 0, 1, 1], [], []>} : vector<2x64xbf16>, vector<64x128xbf16>, vector<2x128xf32> -> vector<2x128xf32>
    %92 = vector.broadcast %18 : vector<1x128xf32> to vector<2x128xf32>
    %93 = arith.addf %91, %92 : vector<2x128xf32>
    %94 = arith.negf %93 : vector<2x128xf32>
    %95 = math.exp %94 : vector<2x128xf32>
    %cst_29 = arith.constant 1.000000e+00 : f32
    %96 = vector.broadcast %cst_29 : f32 to vector<2x128xf32>
    %97 = arith.addf %96, %95 : vector<2x128xf32>
    %98 = arith.divf %96, %97 : vector<2x128xf32>
    %99 = math.tanh %93 : vector<2x128xf32>
    %100 = vector.extract_strided_slice %98 {offsets = [0, 0], sizes = [2, 32], strides = [1, 1]} : vector<2x128xf32> to vector<2x32xf32>
    %101 = vector.extract_strided_slice %98 {offsets = [0, 32], sizes = [2, 32], strides = [1, 1]} : vector<2x128xf32> to vector<2x32xf32>
    %102 = vector.extract_strided_slice %98 {offsets = [0, 96], sizes = [2, 32], strides = [1, 1]} : vector<2x128xf32> to vector<2x32xf32>
    %103 = vector.extract_strided_slice %99 {offsets = [0, 64], sizes = [2, 32], strides = [1, 1]} : vector<2x128xf32> to vector<2x32xf32>
    %104 = arith.mulf %101, %66 : vector<2x32xf32>
    %105 = arith.mulf %100, %103 : vector<2x32xf32>
    %106 = arith.addf %104, %105 : vector<2x32xf32>
    %107 = math.tanh %106 : vector<2x32xf32>
    %108 = arith.mulf %102, %107 : vector<2x32xf32>
    %109 = vector.extract_strided_slice %17 {offsets = [2, 0, 0], sizes = [1, 2, 128], strides = [1, 1, 1]} : vector<8x2x128xf32> to vector<1x2x128xf32>
    %110 = vector.shape_cast %109 : vector<1x2x128xf32> to vector<2x128xf32>
    %111 = arith.truncf %88 : vector<2x32xf32> to vector<2x32xbf16>
    %cst_30 = arith.constant dense<0.000000e+00> : vector<2x128xf32>
    %112 = tpu.matmul %111, %19, %cst_30 {dimension_numbers = #tpu.dot_dimension_numbers<[1], [0], [0], [1], [0, 0, 1, 1], [], []>} : vector<2x32xbf16>, vector<32x128xbf16>, vector<2x128xf32> -> vector<2x128xf32>
    %113 = arith.addf %110, %112 : vector<2x128xf32>
    %114 = arith.negf %113 : vector<2x128xf32>
    %115 = math.exp %114 : vector<2x128xf32>
    %cst_31 = arith.constant 1.000000e+00 : f32
    %116 = vector.broadcast %cst_31 : f32 to vector<2x128xf32>
    %117 = arith.addf %116, %115 : vector<2x128xf32>
    %118 = arith.divf %116, %117 : vector<2x128xf32>
    %119 = math.tanh %113 : vector<2x128xf32>
    %120 = vector.extract_strided_slice %118 {offsets = [0, 0], sizes = [2, 32], strides = [1, 1]} : vector<2x128xf32> to vector<2x32xf32>
    %121 = vector.extract_strided_slice %118 {offsets = [0, 32], sizes = [2, 32], strides = [1, 1]} : vector<2x128xf32> to vector<2x32xf32>
    %122 = vector.extract_strided_slice %118 {offsets = [0, 96], sizes = [2, 32], strides = [1, 1]} : vector<2x128xf32> to vector<2x32xf32>
    %123 = vector.extract_strided_slice %119 {offsets = [0, 64], sizes = [2, 32], strides = [1, 1]} : vector<2x128xf32> to vector<2x32xf32>
    %124 = arith.mulf %121, %86 : vector<2x32xf32>
    %125 = arith.mulf %120, %123 : vector<2x32xf32>
    %126 = arith.addf %124, %125 : vector<2x32xf32>
    %127 = math.tanh %126 : vector<2x32xf32>
    %128 = arith.mulf %122, %127 : vector<2x32xf32>
    %129 = tpu.concatenate %128, %108 in 1 : vector<2x32xf32>, vector<2x32xf32> -> vector<2x64xf32>
    %130 = arith.truncf %129 : vector<2x64xf32> to vector<2x64xbf16>
    %cst_32 = arith.constant dense<0.000000e+00> : vector<2x128xf32>
    %131 = tpu.matmul %130, %20, %cst_32 {dimension_numbers = #tpu.dot_dimension_numbers<[1], [0], [0], [1], [0, 0, 1, 1], [], []>} : vector<2x64xbf16>, vector<64x128xbf16>, vector<2x128xf32> -> vector<2x128xf32>
    %132 = vector.broadcast %18 : vector<1x128xf32> to vector<2x128xf32>
    %133 = arith.addf %131, %132 : vector<2x128xf32>
    %134 = arith.negf %133 : vector<2x128xf32>
    %135 = math.exp %134 : vector<2x128xf32>
    %cst_33 = arith.constant 1.000000e+00 : f32
    %136 = vector.broadcast %cst_33 : f32 to vector<2x128xf32>
    %137 = arith.addf %136, %135 : vector<2x128xf32>
    %138 = arith.divf %136, %137 : vector<2x128xf32>
    %139 = math.tanh %133 : vector<2x128xf32>
    %140 = vector.extract_strided_slice %138 {offsets = [0, 0], sizes = [2, 32], strides = [1, 1]} : vector<2x128xf32> to vector<2x32xf32>
    %141 = vector.extract_strided_slice %138 {offsets = [0, 32], sizes = [2, 32], strides = [1, 1]} : vector<2x128xf32> to vector<2x32xf32>
    %142 = vector.extract_strided_slice %138 {offsets = [0, 96], sizes = [2, 32], strides = [1, 1]} : vector<2x128xf32> to vector<2x32xf32>
    %143 = vector.extract_strided_slice %139 {offsets = [0, 64], sizes = [2, 32], strides = [1, 1]} : vector<2x128xf32> to vector<2x32xf32>
    %144 = arith.mulf %141, %106 : vector<2x32xf32>
    %145 = arith.mulf %140, %143 : vector<2x32xf32>
    %146 = arith.addf %144, %145 : vector<2x32xf32>
    %147 = math.tanh %146 : vector<2x32xf32>
    %148 = arith.mulf %142, %147 : vector<2x32xf32>
    %149 = vector.extract_strided_slice %17 {offsets = [3, 0, 0], sizes = [1, 2, 128], strides = [1, 1, 1]} : vector<8x2x128xf32> to vector<1x2x128xf32>
    %150 = vector.shape_cast %149 : vector<1x2x128xf32> to vector<2x128xf32>
    %151 = arith.truncf %128 : vector<2x32xf32> to vector<2x32xbf16>
    %cst_34 = arith.constant dense<0.000000e+00> : vector<2x128xf32>
    %152 = tpu.matmul %151, %19, %cst_34 {dimension_numbers = #tpu.dot_dimension_numbers<[1], [0], [0], [1], [0, 0, 1, 1], [], []>} : vector<2x32xbf16>, vector<32x128xbf16>, vector<2x128xf32> -> vector<2x128xf32>
    %153 = arith.addf %150, %152 : vector<2x128xf32>
    %154 = arith.negf %153 : vector<2x128xf32>
    %155 = math.exp %154 : vector<2x128xf32>
    %cst_35 = arith.constant 1.000000e+00 : f32
    %156 = vector.broadcast %cst_35 : f32 to vector<2x128xf32>
    %157 = arith.addf %156, %155 : vector<2x128xf32>
    %158 = arith.divf %156, %157 : vector<2x128xf32>
    %159 = math.tanh %153 : vector<2x128xf32>
    %160 = vector.extract_strided_slice %158 {offsets = [0, 0], sizes = [2, 32], strides = [1, 1]} : vector<2x128xf32> to vector<2x32xf32>
    %161 = vector.extract_strided_slice %158 {offsets = [0, 32], sizes = [2, 32], strides = [1, 1]} : vector<2x128xf32> to vector<2x32xf32>
    %162 = vector.extract_strided_slice %158 {offsets = [0, 96], sizes = [2, 32], strides = [1, 1]} : vector<2x128xf32> to vector<2x32xf32>
    %163 = vector.extract_strided_slice %159 {offsets = [0, 64], sizes = [2, 32], strides = [1, 1]} : vector<2x128xf32> to vector<2x32xf32>
    %164 = arith.mulf %161, %126 : vector<2x32xf32>
    %165 = arith.mulf %160, %163 : vector<2x32xf32>
    %166 = arith.addf %164, %165 : vector<2x32xf32>
    %167 = math.tanh %166 : vector<2x32xf32>
    %168 = arith.mulf %162, %167 : vector<2x32xf32>
    %169 = tpu.concatenate %168, %148 in 1 : vector<2x32xf32>, vector<2x32xf32> -> vector<2x64xf32>
    %170 = arith.truncf %169 : vector<2x64xf32> to vector<2x64xbf16>
    %cst_36 = arith.constant dense<0.000000e+00> : vector<2x128xf32>
    %171 = tpu.matmul %170, %20, %cst_36 {dimension_numbers = #tpu.dot_dimension_numbers<[1], [0], [0], [1], [0, 0, 1, 1], [], []>} : vector<2x64xbf16>, vector<64x128xbf16>, vector<2x128xf32> -> vector<2x128xf32>
    %172 = vector.broadcast %18 : vector<1x128xf32> to vector<2x128xf32>
    %173 = arith.addf %171, %172 : vector<2x128xf32>
    %174 = arith.negf %173 : vector<2x128xf32>
    %175 = math.exp %174 : vector<2x128xf32>
    %cst_37 = arith.constant 1.000000e+00 : f32
    %176 = vector.broadcast %cst_37 : f32 to vector<2x128xf32>
    %177 = arith.addf %176, %175 : vector<2x128xf32>
    %178 = arith.divf %176, %177 : vector<2x128xf32>
    %179 = math.tanh %173 : vector<2x128xf32>
    %180 = vector.extract_strided_slice %178 {offsets = [0, 0], sizes = [2, 32], strides = [1, 1]} : vector<2x128xf32> to vector<2x32xf32>
    %181 = vector.extract_strided_slice %178 {offsets = [0, 32], sizes = [2, 32], strides = [1, 1]} : vector<2x128xf32> to vector<2x32xf32>
    %182 = vector.extract_strided_slice %178 {offsets = [0, 96], sizes = [2, 32], strides = [1, 1]} : vector<2x128xf32> to vector<2x32xf32>
    %183 = vector.extract_strided_slice %179 {offsets = [0, 64], sizes = [2, 32], strides = [1, 1]} : vector<2x128xf32> to vector<2x32xf32>
    %184 = arith.mulf %181, %146 : vector<2x32xf32>
    %185 = arith.mulf %180, %183 : vector<2x32xf32>
    %186 = arith.addf %184, %185 : vector<2x32xf32>
    %187 = math.tanh %186 : vector<2x32xf32>
    %188 = arith.mulf %182, %187 : vector<2x32xf32>
    %189 = vector.extract_strided_slice %17 {offsets = [4, 0, 0], sizes = [1, 2, 128], strides = [1, 1, 1]} : vector<8x2x128xf32> to vector<1x2x128xf32>
    %190 = vector.shape_cast %189 : vector<1x2x128xf32> to vector<2x128xf32>
    %191 = arith.truncf %168 : vector<2x32xf32> to vector<2x32xbf16>
    %cst_38 = arith.constant dense<0.000000e+00> : vector<2x128xf32>
    %192 = tpu.matmul %191, %19, %cst_38 {dimension_numbers = #tpu.dot_dimension_numbers<[1], [0], [0], [1], [0, 0, 1, 1], [], []>} : vector<2x32xbf16>, vector<32x128xbf16>, vector<2x128xf32> -> vector<2x128xf32>
    %193 = arith.addf %190, %192 : vector<2x128xf32>
    %194 = arith.negf %193 : vector<2x128xf32>
    %195 = math.exp %194 : vector<2x128xf32>
    %cst_39 = arith.constant 1.000000e+00 : f32
    %196 = vector.broadcast %cst_39 : f32 to vector<2x128xf32>
    %197 = arith.addf %196, %195 : vector<2x128xf32>
    %198 = arith.divf %196, %197 : vector<2x128xf32>
    %199 = math.tanh %193 : vector<2x128xf32>
    %200 = vector.extract_strided_slice %198 {offsets = [0, 0], sizes = [2, 32], strides = [1, 1]} : vector<2x128xf32> to vector<2x32xf32>
    %201 = vector.extract_strided_slice %198 {offsets = [0, 32], sizes = [2, 32], strides = [1, 1]} : vector<2x128xf32> to vector<2x32xf32>
    %202 = vector.extract_strided_slice %198 {offsets = [0, 96], sizes = [2, 32], strides = [1, 1]} : vector<2x128xf32> to vector<2x32xf32>
    %203 = vector.extract_strided_slice %199 {offsets = [0, 64], sizes = [2, 32], strides = [1, 1]} : vector<2x128xf32> to vector<2x32xf32>
    %204 = arith.mulf %201, %166 : vector<2x32xf32>
    %205 = arith.mulf %200, %203 : vector<2x32xf32>
    %206 = arith.addf %204, %205 : vector<2x32xf32>
    %207 = math.tanh %206 : vector<2x32xf32>
    %208 = arith.mulf %202, %207 : vector<2x32xf32>
    %209 = tpu.concatenate %208, %188 in 1 : vector<2x32xf32>, vector<2x32xf32> -> vector<2x64xf32>
    %210 = arith.truncf %209 : vector<2x64xf32> to vector<2x64xbf16>
    %cst_40 = arith.constant dense<0.000000e+00> : vector<2x128xf32>
    %211 = tpu.matmul %210, %20, %cst_40 {dimension_numbers = #tpu.dot_dimension_numbers<[1], [0], [0], [1], [0, 0, 1, 1], [], []>} : vector<2x64xbf16>, vector<64x128xbf16>, vector<2x128xf32> -> vector<2x128xf32>
    %212 = vector.broadcast %18 : vector<1x128xf32> to vector<2x128xf32>
    %213 = arith.addf %211, %212 : vector<2x128xf32>
    %214 = arith.negf %213 : vector<2x128xf32>
    %215 = math.exp %214 : vector<2x128xf32>
    %cst_41 = arith.constant 1.000000e+00 : f32
    %216 = vector.broadcast %cst_41 : f32 to vector<2x128xf32>
    %217 = arith.addf %216, %215 : vector<2x128xf32>
    %218 = arith.divf %216, %217 : vector<2x128xf32>
    %219 = math.tanh %213 : vector<2x128xf32>
    %220 = vector.extract_strided_slice %218 {offsets = [0, 0], sizes = [2, 32], strides = [1, 1]} : vector<2x128xf32> to vector<2x32xf32>
    %221 = vector.extract_strided_slice %218 {offsets = [0, 32], sizes = [2, 32], strides = [1, 1]} : vector<2x128xf32> to vector<2x32xf32>
    %222 = vector.extract_strided_slice %218 {offsets = [0, 96], sizes = [2, 32], strides = [1, 1]} : vector<2x128xf32> to vector<2x32xf32>
    %223 = vector.extract_strided_slice %219 {offsets = [0, 64], sizes = [2, 32], strides = [1, 1]} : vector<2x128xf32> to vector<2x32xf32>
    %224 = arith.mulf %221, %186 : vector<2x32xf32>
    %225 = arith.mulf %220, %223 : vector<2x32xf32>
    %226 = arith.addf %224, %225 : vector<2x32xf32>
    %227 = math.tanh %226 : vector<2x32xf32>
    %228 = arith.mulf %222, %227 : vector<2x32xf32>
    %229 = vector.extract_strided_slice %17 {offsets = [5, 0, 0], sizes = [1, 2, 128], strides = [1, 1, 1]} : vector<8x2x128xf32> to vector<1x2x128xf32>
    %230 = vector.shape_cast %229 : vector<1x2x128xf32> to vector<2x128xf32>
    %231 = arith.truncf %208 : vector<2x32xf32> to vector<2x32xbf16>
    %cst_42 = arith.constant dense<0.000000e+00> : vector<2x128xf32>
    %232 = tpu.matmul %231, %19, %cst_42 {dimension_numbers = #tpu.dot_dimension_numbers<[1], [0], [0], [1], [0, 0, 1, 1], [], []>} : vector<2x32xbf16>, vector<32x128xbf16>, vector<2x128xf32> -> vector<2x128xf32>
    %233 = arith.addf %230, %232 : vector<2x128xf32>
    %234 = arith.negf %233 : vector<2x128xf32>
    %235 = math.exp %234 : vector<2x128xf32>
    %cst_43 = arith.constant 1.000000e+00 : f32
    %236 = vector.broadcast %cst_43 : f32 to vector<2x128xf32>
    %237 = arith.addf %236, %235 : vector<2x128xf32>
    %238 = arith.divf %236, %237 : vector<2x128xf32>
    %239 = math.tanh %233 : vector<2x128xf32>
    %240 = vector.extract_strided_slice %238 {offsets = [0, 0], sizes = [2, 32], strides = [1, 1]} : vector<2x128xf32> to vector<2x32xf32>
    %241 = vector.extract_strided_slice %238 {offsets = [0, 32], sizes = [2, 32], strides = [1, 1]} : vector<2x128xf32> to vector<2x32xf32>
    %242 = vector.extract_strided_slice %238 {offsets = [0, 96], sizes = [2, 32], strides = [1, 1]} : vector<2x128xf32> to vector<2x32xf32>
    %243 = vector.extract_strided_slice %239 {offsets = [0, 64], sizes = [2, 32], strides = [1, 1]} : vector<2x128xf32> to vector<2x32xf32>
    %244 = arith.mulf %241, %206 : vector<2x32xf32>
    %245 = arith.mulf %240, %243 : vector<2x32xf32>
    %246 = arith.addf %244, %245 : vector<2x32xf32>
    %247 = math.tanh %246 : vector<2x32xf32>
    %248 = arith.mulf %242, %247 : vector<2x32xf32>
    %249 = tpu.concatenate %248, %228 in 1 : vector<2x32xf32>, vector<2x32xf32> -> vector<2x64xf32>
    %250 = arith.truncf %249 : vector<2x64xf32> to vector<2x64xbf16>
    %cst_44 = arith.constant dense<0.000000e+00> : vector<2x128xf32>
    %251 = tpu.matmul %250, %20, %cst_44 {dimension_numbers = #tpu.dot_dimension_numbers<[1], [0], [0], [1], [0, 0, 1, 1], [], []>} : vector<2x64xbf16>, vector<64x128xbf16>, vector<2x128xf32> -> vector<2x128xf32>
    %252 = vector.broadcast %18 : vector<1x128xf32> to vector<2x128xf32>
    %253 = arith.addf %251, %252 : vector<2x128xf32>
    %254 = arith.negf %253 : vector<2x128xf32>
    %255 = math.exp %254 : vector<2x128xf32>
    %cst_45 = arith.constant 1.000000e+00 : f32
    %256 = vector.broadcast %cst_45 : f32 to vector<2x128xf32>
    %257 = arith.addf %256, %255 : vector<2x128xf32>
    %258 = arith.divf %256, %257 : vector<2x128xf32>
    %259 = math.tanh %253 : vector<2x128xf32>
    %260 = vector.extract_strided_slice %258 {offsets = [0, 0], sizes = [2, 32], strides = [1, 1]} : vector<2x128xf32> to vector<2x32xf32>
    %261 = vector.extract_strided_slice %258 {offsets = [0, 32], sizes = [2, 32], strides = [1, 1]} : vector<2x128xf32> to vector<2x32xf32>
    %262 = vector.extract_strided_slice %258 {offsets = [0, 96], sizes = [2, 32], strides = [1, 1]} : vector<2x128xf32> to vector<2x32xf32>
    %263 = vector.extract_strided_slice %259 {offsets = [0, 64], sizes = [2, 32], strides = [1, 1]} : vector<2x128xf32> to vector<2x32xf32>
    %264 = arith.mulf %261, %226 : vector<2x32xf32>
    %265 = arith.mulf %260, %263 : vector<2x32xf32>
    %266 = arith.addf %264, %265 : vector<2x32xf32>
    %267 = math.tanh %266 : vector<2x32xf32>
    %268 = arith.mulf %262, %267 : vector<2x32xf32>
    %269 = vector.extract_strided_slice %17 {offsets = [6, 0, 0], sizes = [1, 2, 128], strides = [1, 1, 1]} : vector<8x2x128xf32> to vector<1x2x128xf32>
    %270 = vector.shape_cast %269 : vector<1x2x128xf32> to vector<2x128xf32>
    %271 = arith.truncf %248 : vector<2x32xf32> to vector<2x32xbf16>
    %cst_46 = arith.constant dense<0.000000e+00> : vector<2x128xf32>
    %272 = tpu.matmul %271, %19, %cst_46 {dimension_numbers = #tpu.dot_dimension_numbers<[1], [0], [0], [1], [0, 0, 1, 1], [], []>} : vector<2x32xbf16>, vector<32x128xbf16>, vector<2x128xf32> -> vector<2x128xf32>
    %273 = arith.addf %270, %272 : vector<2x128xf32>
    %274 = arith.negf %273 : vector<2x128xf32>
    %275 = math.exp %274 : vector<2x128xf32>
    %cst_47 = arith.constant 1.000000e+00 : f32
    %276 = vector.broadcast %cst_47 : f32 to vector<2x128xf32>
    %277 = arith.addf %276, %275 : vector<2x128xf32>
    %278 = arith.divf %276, %277 : vector<2x128xf32>
    %279 = math.tanh %273 : vector<2x128xf32>
    %280 = vector.extract_strided_slice %278 {offsets = [0, 0], sizes = [2, 32], strides = [1, 1]} : vector<2x128xf32> to vector<2x32xf32>
    %281 = vector.extract_strided_slice %278 {offsets = [0, 32], sizes = [2, 32], strides = [1, 1]} : vector<2x128xf32> to vector<2x32xf32>
    %282 = vector.extract_strided_slice %278 {offsets = [0, 96], sizes = [2, 32], strides = [1, 1]} : vector<2x128xf32> to vector<2x32xf32>
    %283 = vector.extract_strided_slice %279 {offsets = [0, 64], sizes = [2, 32], strides = [1, 1]} : vector<2x128xf32> to vector<2x32xf32>
    %284 = arith.mulf %281, %246 : vector<2x32xf32>
    %285 = arith.mulf %280, %283 : vector<2x32xf32>
    %286 = arith.addf %284, %285 : vector<2x32xf32>
    %287 = math.tanh %286 : vector<2x32xf32>
    %288 = arith.mulf %282, %287 : vector<2x32xf32>
    %289 = tpu.concatenate %288, %268 in 1 : vector<2x32xf32>, vector<2x32xf32> -> vector<2x64xf32>
    %290 = arith.truncf %289 : vector<2x64xf32> to vector<2x64xbf16>
    %cst_48 = arith.constant dense<0.000000e+00> : vector<2x128xf32>
    %291 = tpu.matmul %290, %20, %cst_48 {dimension_numbers = #tpu.dot_dimension_numbers<[1], [0], [0], [1], [0, 0, 1, 1], [], []>} : vector<2x64xbf16>, vector<64x128xbf16>, vector<2x128xf32> -> vector<2x128xf32>
    %292 = vector.broadcast %18 : vector<1x128xf32> to vector<2x128xf32>
    %293 = arith.addf %291, %292 : vector<2x128xf32>
    %294 = arith.negf %293 : vector<2x128xf32>
    %295 = math.exp %294 : vector<2x128xf32>
    %cst_49 = arith.constant 1.000000e+00 : f32
    %296 = vector.broadcast %cst_49 : f32 to vector<2x128xf32>
    %297 = arith.addf %296, %295 : vector<2x128xf32>
    %298 = arith.divf %296, %297 : vector<2x128xf32>
    %299 = math.tanh %293 : vector<2x128xf32>
    %300 = vector.extract_strided_slice %298 {offsets = [0, 0], sizes = [2, 32], strides = [1, 1]} : vector<2x128xf32> to vector<2x32xf32>
    %301 = vector.extract_strided_slice %298 {offsets = [0, 32], sizes = [2, 32], strides = [1, 1]} : vector<2x128xf32> to vector<2x32xf32>
    %302 = vector.extract_strided_slice %298 {offsets = [0, 96], sizes = [2, 32], strides = [1, 1]} : vector<2x128xf32> to vector<2x32xf32>
    %303 = vector.extract_strided_slice %299 {offsets = [0, 64], sizes = [2, 32], strides = [1, 1]} : vector<2x128xf32> to vector<2x32xf32>
    %304 = arith.mulf %301, %266 : vector<2x32xf32>
    %305 = arith.mulf %300, %303 : vector<2x32xf32>
    %306 = arith.addf %304, %305 : vector<2x32xf32>
    %307 = math.tanh %306 : vector<2x32xf32>
    %308 = arith.mulf %302, %307 : vector<2x32xf32>
    %309 = vector.extract_strided_slice %17 {offsets = [7, 0, 0], sizes = [1, 2, 128], strides = [1, 1, 1]} : vector<8x2x128xf32> to vector<1x2x128xf32>
    %310 = vector.shape_cast %309 : vector<1x2x128xf32> to vector<2x128xf32>
    %311 = arith.truncf %288 : vector<2x32xf32> to vector<2x32xbf16>
    %cst_50 = arith.constant dense<0.000000e+00> : vector<2x128xf32>
    %312 = tpu.matmul %311, %19, %cst_50 {dimension_numbers = #tpu.dot_dimension_numbers<[1], [0], [0], [1], [0, 0, 1, 1], [], []>} : vector<2x32xbf16>, vector<32x128xbf16>, vector<2x128xf32> -> vector<2x128xf32>
    %313 = arith.addf %310, %312 : vector<2x128xf32>
    %314 = arith.negf %313 : vector<2x128xf32>
    %315 = math.exp %314 : vector<2x128xf32>
    %cst_51 = arith.constant 1.000000e+00 : f32
    %316 = vector.broadcast %cst_51 : f32 to vector<2x128xf32>
    %317 = arith.addf %316, %315 : vector<2x128xf32>
    %318 = arith.divf %316, %317 : vector<2x128xf32>
    %319 = math.tanh %313 : vector<2x128xf32>
    %320 = vector.extract_strided_slice %318 {offsets = [0, 0], sizes = [2, 32], strides = [1, 1]} : vector<2x128xf32> to vector<2x32xf32>
    %321 = vector.extract_strided_slice %318 {offsets = [0, 32], sizes = [2, 32], strides = [1, 1]} : vector<2x128xf32> to vector<2x32xf32>
    %322 = vector.extract_strided_slice %318 {offsets = [0, 96], sizes = [2, 32], strides = [1, 1]} : vector<2x128xf32> to vector<2x32xf32>
    %323 = vector.extract_strided_slice %319 {offsets = [0, 64], sizes = [2, 32], strides = [1, 1]} : vector<2x128xf32> to vector<2x32xf32>
    %324 = arith.mulf %321, %286 : vector<2x32xf32>
    %325 = arith.mulf %320, %323 : vector<2x32xf32>
    %326 = arith.addf %324, %325 : vector<2x32xf32>
    %327 = math.tanh %326 : vector<2x32xf32>
    %328 = arith.mulf %322, %327 : vector<2x32xf32>
    %329 = tpu.concatenate %328, %308 in 1 : vector<2x32xf32>, vector<2x32xf32> -> vector<2x64xf32>
    %330 = arith.truncf %329 : vector<2x64xf32> to vector<2x64xbf16>
    %cst_52 = arith.constant dense<0.000000e+00> : vector<2x128xf32>
    %331 = tpu.matmul %330, %20, %cst_52 {dimension_numbers = #tpu.dot_dimension_numbers<[1], [0], [0], [1], [0, 0, 1, 1], [], []>} : vector<2x64xbf16>, vector<64x128xbf16>, vector<2x128xf32> -> vector<2x128xf32>
    %332 = vector.broadcast %18 : vector<1x128xf32> to vector<2x128xf32>
    %333 = arith.addf %331, %332 : vector<2x128xf32>
    %334 = arith.negf %333 : vector<2x128xf32>
    %335 = math.exp %334 : vector<2x128xf32>
    %cst_53 = arith.constant 1.000000e+00 : f32
    %336 = vector.broadcast %cst_53 : f32 to vector<2x128xf32>
    %337 = arith.addf %336, %335 : vector<2x128xf32>
    %338 = arith.divf %336, %337 : vector<2x128xf32>
    %339 = math.tanh %333 : vector<2x128xf32>
    %340 = vector.extract_strided_slice %338 {offsets = [0, 0], sizes = [2, 32], strides = [1, 1]} : vector<2x128xf32> to vector<2x32xf32>
    %341 = vector.extract_strided_slice %338 {offsets = [0, 32], sizes = [2, 32], strides = [1, 1]} : vector<2x128xf32> to vector<2x32xf32>
    %342 = vector.extract_strided_slice %338 {offsets = [0, 96], sizes = [2, 32], strides = [1, 1]} : vector<2x128xf32> to vector<2x32xf32>
    %343 = vector.extract_strided_slice %339 {offsets = [0, 64], sizes = [2, 32], strides = [1, 1]} : vector<2x128xf32> to vector<2x32xf32>
    %344 = arith.mulf %341, %306 : vector<2x32xf32>
    %345 = arith.mulf %340, %343 : vector<2x32xf32>
    %346 = arith.addf %344, %345 : vector<2x32xf32>
    %347 = math.tanh %346 : vector<2x32xf32>
    %348 = arith.mulf %342, %347 : vector<2x32xf32>
    %c264 = arith.constant 264 : index
    %c0_54 = arith.constant 0 : index
    %349 = vector.load %arg3[%c264, %c0_54] : memref<296x128xf32, #tpu.memory_space<vmem>>, vector<32x128xf32>
    %c258 = arith.constant 258 : index
    %c0_55 = arith.constant 0 : index
    %350 = vector.load %arg3[%c258, %c0_55] : memref<296x128xf32, #tpu.memory_space<vmem>>, vector<1x128xf32>
    %cst_56 = arith.constant dense<0.000000e+00> : vector<2x128xf32>
    %351 = tpu.matmul %348, %349, %cst_56 {dimension_numbers = #tpu.dot_dimension_numbers<[1], [0], [0], [1], [0, 0, 1, 1], [], []>} : vector<2x32xf32>, vector<32x128xf32>, vector<2x128xf32> -> vector<2x128xf32>
    %352 = vector.broadcast %350 : vector<1x128xf32> to vector<2x128xf32>
    %353 = arith.addf %351, %352 : vector<2x128xf32>
    %c0_57 = arith.constant 0 : index
    %c0_58 = arith.constant 0 : index
    %354 = vector.load %arg5[%c0_57, %c0_58] : memref<2x128xf32, #tpu.memory_space<vmem>>, vector<2x128xf32>
    tpu.vector_store %arg5[%c0_57, %c0_58], %353 {strides = array<i32>} : memref<2x128xf32, #tpu.memory_space<vmem>>, vector<2x128xf32>,
    return
  }
}

</mosaic_0001>

<bundles_post_ra>
// kernel: cnn_lstm_forward.1
= control target key start
LH: loop header
LB: loop body
LE: loop exit
PB: predicated region body
PF: predicated region fallthrough
CT: control target
= control target key end

     0   :  { %v2517_v7 = vmov 0.0   ;;  %vm47_vm0 = vcmask 1044480   ;;  %vm43_vm1 = vcmask 302080   ;;  %s3117_s0 = inlined_call_operand.vmem [shape: f32[37,512], index: 0, kind: input, shape index: {}]   ;;  %s3118_s1 = inlined_call_operand.vmem [shape: f32[8,37], index: 1, kind: input, shape index: {}]   ;;  %s3119_s2 = inlined_call_operand.vmem [shape: f32[4,2,32], index: 2, kind: input, shape index: {}]   ;;  %s3120_s3 = inlined_call_operand.vmem [shape: f32[296,128], index: 3, kind: input, shape index: {}]   ;;  %s3121_s4 = inlined_call_operand.vmem [shape: bf16[96,128], index: 4, kind: input, shape index: {}]   ;;  %s3122_s5 = inlined_call_operand.hbm [shape: f32[2,128], index: 5, kind: output, shape index: {}]  }
   0x1   :  { %v24_v0 = vld [vmem:[%s3117_s0 + $0x8] sm:$0xff]  ;;  %v26_v2 = vld [vmem:[%s3117_s0 + $0x18] sm:$0xff]  ;;  %v23_v5 = vld [vmem:[%s3117_s0] sm:$0xff]  ;;  %124 = vmatprep.mubr.f32.mxu0 %v2517_v7  ;;  %195 = vmatprep.mubr.f32.mxu1 %v2517_v7 }
   0x2   :  { %v28_v1 = vld [vmem:[%s3117_s0 + $0x28] sm:$0xff]  ;;  %v30_v4 = vld [vmem:[%s3117_s0 + $0x38] sm:$0xff]  ;;  %v27_v6 = vld [vmem:[%s3117_s0 + $0x20] sm:$0xff] }
   0x3   :  { %v2259_v3 = vpack.c.bf16 %v28_v1, %v24_v0  ;;  %v2267_v8 = vpack.c.bf16 %v30_v4, %v26_v2  ;;  %v2261_v9 = vpack.c.bf16 %v27_v6, %v23_v5  ;;  %v25_v10 = vld [vmem:[%s3117_s0 + $0x10] sm:$0xff]  ;;  %v32_v12 = vld [vmem:[%s3117_s0 + $0x48] sm:$0xff]  ;;  %v34_v15 = vld [vmem:[%s3117_s0 + $0x58] sm:$0xff] }
   0x4   :  { %v29_v11 = vld [vmem:[%s3117_s0 + $0x30] sm:$0xff]  ;;  %v36_v14 = vld [vmem:[%s3117_s0 + $0x68] sm:$0xff]  ;;  %v38_v16 = vld [vmem:[%s3117_s0 + $0x78] sm:$0xff] }
   0x5   :  { %2260 = vmatprep.subr.bf16.mxu0 %v2259_v3  ;;  %v2269_v13 = vpack.c.bf16 %v29_v11, %v25_v10  ;;  %2268 = vmatprep.subr.bf16.mxu1 %v2267_v8  ;;  %v2263_v17 = vpack.c.bf16 %v36_v14, %v32_v12  ;;  %v2271_v18 = vpack.c.bf16 %v38_v16, %v34_v15  ;;  %v31_v19 = vld [vmem:[%s3117_s0 + $0x40] sm:$0xff]  ;;  %v33_v21 = vld [vmem:[%s3117_s0 + $0x50] sm:$0xff]  ;;  %v40_v25 = vld [vmem:[%s3117_s0 + $0x88] sm:$0x1f] }
   0x6   :  { %2262 = vmatpush1.bf16.msra.mxu0 %v2261_v9  ;;  %v35_v20 = vld [vmem:[%s3117_s0 + $0x60] sm:$0xff]  ;;  %v37_v23 = vld [vmem:[%s3117_s0 + $0x70] sm:$0xff]  ;;  %v42_v26 = vld [vmem:[%s3117_s0 + $0x98] sm:$0x1f] }
   0x7   :  { %2270 = vmatpush1.bf16.msra.mxu1 %v2269_v13  ;;  %v2265_v22 = vpack.c.bf16 %v35_v20, %v31_v19  ;;  %2264 = vmatprep.subr.bf16.mxu0 %v2263_v17  ;;  %v2273_v24 = vpack.c.bf16 %v37_v23, %v33_v21  ;;  %v222_v27 = vld [vmem:[%s3120_s3 + $0x80] sm:$0xff]  ;;  %v223_v28 = vld [vmem:[%s3120_s3 + $0x88] sm:$0xff]  ;;  %v224_v32 = vld [vmem:[%s3120_s3 + $0x90] sm:$0xff] }
   0x8   :  { %2272 = vmatprep.subr.bf16.mxu1 %v2271_v18  ;;  %v206_v29 = vld [vmem:[%s3120_s3] sm:$0xff]  ;;  %v207_v30 = vld [vmem:[%s3120_s3 + $0x8] sm:$0xff]  ;;  %v225_v33 = vld [vmem:[%s3120_s3 + $0x98] sm:$0xff]  ;;  %v2275_v36 = vpack.c.bf16 %v223_v28, %v222_v27 }
   0x9   :  { %v39_v31 = vld [vmem:[%s3117_s0 + $0x80] sm:$0x1f]  ;;  %v41_v34 = vld [vmem:[%s3117_s0 + $0x90] sm:$0x1f]  ;;  %v2277_v37 = vpack.c.bf16 %v207_v30, %v206_v29  ;;  %v2279_v38 = vpack.c.bf16 %v225_v33, %v224_v32  ;;  %v209_v40 = vld [vmem:[%s3120_s3 + $0x18] sm:$0xff] }
   0xa   :  { %2266 = vmatpush1.bf16.msra.mxu0 %v2265_v22  ;;  %v22_v35 = vld [vmem:[%s3118_s1] sm:$0xff]  ;;  %v208_v39 = vld [vmem:[%s3120_s3 + $0x10] sm:$0xff]  ;;  %v227_v42 = vld [vmem:[%s3120_s3 + $0xa8] sm:$0xff] }
   0xb   :  { %2274 = vmatpush1.bf16.msra.mxu1 %v2273_v24  ;;  %1898 = vmatprep.subr.msk.mxu0 %vm47_vm0, %v40_v25  ;;  %v226_v41 = vld [vmem:[%s3120_s3 + $0xa0] sm:$0xff]  ;;  %v2281_v43 = vpack.c.bf16 %v209_v40, %v208_v39  ;;  %v211_v45 = vld [vmem:[%s3120_s3 + $0x28] sm:$0xff]  ;;  %v228_v46 = vld [vmem:[%s3120_s3 + $0xb0] sm:$0xff] }
   0xc   :  { %1901 = vmatprep.subr.msk.mxu1 %vm47_vm0, %v42_v26  ;;  %v210_v44 = vld [vmem:[%s3120_s3 + $0x20] sm:$0xff]  ;;  %v2283_v47 = vpack.c.bf16 %v227_v42, %v226_v41  ;;  %v229_v48 = vld [vmem:[%s3120_s3 + $0xb8] sm:$0xff]  ;;  %v212_v49 = vld [vmem:[%s3120_s3 + $0x30] sm:$0xff] }
   0xd   :  { %v2285_v50 = vpack.c.bf16 %v211_v45, %v210_v44  ;;  %v2287_v51 = vpack.c.bf16 %v229_v48, %v228_v46  ;;  %v213_v52 = vld [vmem:[%s3120_s3 + $0x38] sm:$0xff] }
   0xe   :  { %1899 = vmatpush1.msk.msra.mxu0 %vm47_vm0, %v39_v31 }
   0xf   :  { %1902 = vmatpush1.msk.msra.mxu1 %vm47_vm0, %v41_v34  ;;  %1900 = vmatmul.mubr.msk.f32.vlgmr.msra.gmra.mrb[0].mxu0 %vm43_vm1, %v22_v35 }
  0x10   :  { %1903 = vmatmul.mubr.msk.f32.vlgmr.msra.gmra.mrb[0].mxu1 %vm43_vm1, %v22_v35  ;;  %2276 = vmatprep.subr.bf16.mxu0 %v2275_v36 }
  0x11   :  { %2308 = vmatprep.subr.bf16.mxu1 %v2275_v36  ;;  %2278 = vmatpush3.bf16.msra.mxu0 %v2277_v37 }
  0x12   :  { %2310 = vmatpush3.bf16.msra.mxu1 %v2277_v37  ;;  %2280 = vmatprep.subr.bf16.mxu0 %v2279_v38 }
  0x13   :  { %2312 = vmatprep.subr.bf16.mxu1 %v2279_v38 }
  0x15   :  { %2282 = vmatpush3.bf16.msra.mxu0 %v2281_v43 }
  0x16   :  { %2314 = vmatpush3.bf16.msra.mxu1 %v2281_v43  ;;  %2284 = vmatprep.subr.bf16.mxu0 %v2283_v47 }
  0x17   :  { %10 = vsyncpa [#allocation3], 0  ;;  %2316 = vmatprep.subr.bf16.mxu1 %v2283_v47  ;;  %v230_v53 = vld [vmem:[%s3120_s3 + $0xc0] sm:$0xff]  ;;  %v231_v54 = vld [vmem:[%s3120_s3 + $0xc8] sm:$0xff]  ;;  %v2289_v55 = vpack.c.bf16 %v213_v52, %v212_v49  ;;  %vm2518_vm2 = vmmov 0   ;;  %vm573_vm3 = vcmask 261120   ;;  %v388_v29 = vlaneseq }
  0x18   :  { %v2291_v56 = vpack.c.bf16 %v231_v54, %v230_v53  ;;  %v214_v57 = vld [vmem:[%s3120_s3 + $0x40] sm:$0xff]  ;;  %v215_v58 = vld [vmem:[%s3120_s3 + $0x48] sm:$0xff]  ;;  %v232_v59 = vld [vmem:[%s3120_s3 + $0xd0] sm:$0xff]  ;;  %v2519_v27 = vmov 1966171168   ;;  %vm531_vm4 = vcmask 1040384  }
  0x19   :  { %2286 = vmatpush3.bf16.msra.mxu0 %v2285_v50  ;;  %v233_v60 = vld [vmem:[%s3120_s3 + $0xd8] sm:$0xff]  ;;  %v2293_v61 = vpack.c.bf16 %v215_v58, %v214_v57  ;;  %v216_v63 = vld [vmem:[%s3120_s3 + $0x50] sm:$0xff]  ;;  %v234_v1 = vld [vmem:[%s3120_s3 + $0xe0] sm:$0xff]  ;;  %v386_v28 = vunpack.c.l.s4 %v2519_v27  ;;  %v389_v31 = vshrl.u32 %v388_v29, 7  ;;  %s2520_s1 = smov 64   ;;  %s2521_s29 = smov 32  }
  0x1a   :  { %2318 = vmatpush3.bf16.msra.mxu1 %v2285_v50  ;;  %2288 = vmatprep.subr.bf16.mxu0 %v2287_v51  ;;  %v2295_v62 = vpack.c.bf16 %v233_v60, %v232_v59  ;;  %v217_v0 = vld [vmem:[%s3120_s3 + $0x58] sm:$0xff]  ;;  %v235_v2 = vld [vmem:[%s3120_s3 + $0xe8] sm:$0xff]  ;;  %v218_v5 = vld [vmem:[%s3120_s3 + $0x60] sm:$0xff]  ;;  %vm684_vm5 = vcmask 523264   ;;  %s2523_s6 = smov [#allocation2]  }
  0x1b   :  { %2320 = vmatprep.subr.bf16.mxu1 %v2287_v51  ;;  %v2297_v3 = vpack.c.bf16 %v217_v0, %v216_v63  ;;  %v2299_v4 = vpack.c.bf16 %v235_v2, %v234_v1  ;;  %v219_v6 = vld [vmem:[%s3120_s3 + $0x68] sm:$0xff]  ;;  %v236_v9 = vld [vmem:[%s3120_s3 + $0xf0] sm:$0xff]  ;;  %v237_v10 = vld [vmem:[%s3120_s3 + $0xf8] sm:$0xff]  ;;  %v387_v30 = vunpack.c.0.s8 %v386_v28  ;;  %v493_v46 = vsub.s32 0, %v389_v31  ;;  %s1890_s7 = sshll.u32 %s2523_s6, 4  ;;  %s1891_s7 = int_to_ptr.vmem [resolvable:$true] %s1890_s7 }
  0x1c   :  { %v2301_v8 = vpack.c.bf16 %v219_v6, %v218_v5  ;;  %v2303_v11 = vpack.c.bf16 %v237_v10, %v236_v9  ;;  %v220_v12 = vld [vmem:[%s3120_s3 + $0x70] sm:$0xff]  ;;  %v221_v13 = vld [vmem:[%s3120_s3 + $0x78] sm:$0xff]  ;;  %v2724_v22 = vld [vmem:[%s3121_s4] sm:$0xff]   ;;  %s2493_s8 = scalar_lea.vmem %s1891_s7, 32  ;;  %p2498_p1 = scmp.lt.s32.totalorder %s1891_s7, %s1891_s7 }
  0x1d   :  { %2290 = vmatpush3.bf16.msra.mxu0 %v2289_v55  ;;  %v2305_v14 = vpack.c.bf16 %v221_v13, %v220_v12  ;;  %v2731_v24 = vld [vmem:[%s3121_s4 + $0x8] sm:$0xff]   ;;  %v553_v25 = vld [vmem:[%s3119_s2] sm:$0x3]  ;;  %v390_v37 = vsub.s32 %v387_v30, %v389_v31  ;;  %v1906_v30 = vld [vmem:[%s3119_s2 + $0x4] sm:$0x3]  ;;  %p2494_p0 = scmp.ne.s32.totalorder %s1891_s7, %s2493_s8  ;;  %p2499_p2 = scmp.lt.s32.totalorder %s2493_s8, %s2493_s8 }
  0x1e   :  { %2322 = vmatpush3.bf16.msra.mxu1 %v2289_v55  ;;  %2292 = vmatprep.subr.bf16.mxu0 %v2291_v56  ;;  %v560_v26 = vpack.c.bf16 %v553_v25, %v553_v25  ;;  %v1904_v34 = vld [vmem:[%s3120_s3 + $0x100] ss:$0 sm:$0xff] }
  0x1f   :  { %2324 = vmatprep.subr.bf16.mxu1 %v2291_v56  ;;  %p2500_p3 = por %p2499_p2, %p2498_p1 }
  0x21   :  { %2294 = vmatpush3.bf16.msra.mxu0 %v2293_v61  ;;  %p2501_p4 = pnand %p2500_p3, %p2494_p0 }
  0x22   :  { %2326 = vmatpush3.bf16.msra.mxu1 %v2293_v61  ;;  %2296 = vmatprep.subr.bf16.mxu0 %v2295_v62 }
  0x23   :  { %2328 = vmatprep.subr.bf16.mxu1 %v2295_v62 }
  0x25   :  { %2298 = vmatpush3.bf16.msra.mxu0 %v2297_v3 }
  0x26   :  { %2330 = vmatpush3.bf16.msra.mxu1 %v2297_v3  ;;  %2300 = vmatprep.subr.bf16.mxu0 %v2299_v4 }
  0x27   :  { %2332 = vmatprep.subr.bf16.mxu1 %v2299_v4 }
  0x29   :  { %2302 = vmatpush3.bf16.msra.mxu0 %v2301_v8 }
  0x2a   :  { %2334 = vmatpush3.bf16.msra.mxu1 %v2301_v8  ;;  %2304 = vmatprep.subr.bf16.mxu0 %v2303_v11 }
  0x2b   :  { %2336 = vmatprep.subr.bf16.mxu1 %v2303_v11 }
  0x2d   :  { %2306 = vmatpush3.bf16.msra.mxu0 %v2305_v14 }
  0x2e   :  { %2338 = vmatpush3.bf16.msra.mxu1 %v2305_v14  ;;  %2108 = vmatprep.subr.bf16.mxu0 %v2517_v7 }
  0x2f   :  { %2088 = vmatprep.subr.bf16.mxu1 %v2517_v7 }
  0xe2   :  { %v126_v15 = vpop.f32.mrb[0].mxu0 }
  0xe3   :  { %v202_v16 = vmax.f32 %v126_v15, 0.0  ;;  %v197_v17 = vpop.f32.mrb[0].mxu1  ;;  %v128_v18 = vpop.f32.mrb[1].mxu0 }
  0xe4   :  { %v203_v19 = vmax.f32 %v128_v18, 0.0  ;;  %v199_v20 = vpop.f32.mrb[1].mxu1  ;;  %v204_v23 = vmax.f32 %v197_v17, 0.0 }
  0xe5   :  { %v205_v21 = vmax.f32 %v199_v20, 0.0 }
  0xe6   :  { %307 = vmatprep.mubr.f32.mxu0 %v203_v19 }
  0xe7   :  { %377 = vmatprep.mubr.f32.mxu1 %v205_v21  ;;  %308 = vmatmul.mubr.f32.vlgmr.msra.gmra.mrb[2].mxu0 %v202_v16 }
  0xe8   :  { %378 = vmatmul.mubr.f32.vlgmr.msra.gmra.mrb[2].mxu1 %v204_v23  ;;  %2109 = vmatpush3.bf16.msra.mxu0 %v2724_v22 }
  0xe9   :  { %2089 = vmatpush3.bf16.msra.mxu1 %v2724_v22  ;;  %2092 = vmatprep.mubr.msk.bf16.mxu1 %vm2518_vm2, %v2517_v7 }
  0xea   :  { %2090 = vmatprep.subr.bf16.mxu1 %v2517_v7  ;;  %2110 = vmatprep.subr.bf16.mxu0 %v2517_v7 }
  0xeb   :  { %2112 = vmatprep.mubr.msk.bf16.mxu0 %vm2518_vm2, %v2517_v7 }
  0xec   :  { %2111 = vmatpush3.bf16.msra.mxu0 %v2731_v24 }
  0xed   :  { %2091 = vmatpush3.bf16.msra.mxu1 %v2731_v24  ;;  %2116 = vmatprep.subr.bf16.mxu0 %v2517_v7 }
  0xee   :  { %2096 = vmatprep.subr.bf16.mxu1 %v2517_v7 }
  0xf0   :  { %2093 = vmatmul.mubr.msk.bf16.vlgmr.msra.gmra.mrb[4].mxu1 %vm573_vm3, %v560_v26 }
  0xf1   :  { %2104 = vmatprep.mubr.msk.bf16.mxu1 %vm2518_vm2, %v2517_v7 }
 0x1ba   :  { %v1981_v32 = vpop.f32.mrb[2].mxu0 }
 0x1bb   :  { %v2016_v33 = vpop.f32.mrb[2].mxu1  ;;  %v1982_v35 = vpop.f32.mrb[3].mxu0 }
 0x1bc   :  { %v1983_v36 = vadd.f32 %v1982_v35, %v1981_v32  ;;  %v2017_v38 = vpop.f32.mrb[3].mxu1 }
 0x1bd   :  { %v2018_v39 = vadd.f32 %v2017_v38, %v2016_v33 }
 0x1be   :  { %v310_v40 = vadd.f32 %v1983_v36, %v1904_v34 }
 0x1bf   :  { %v380_v41 = vadd.f32 %v2018_v39, %v1904_v34 }
 0x1c0   :  { %v384_v42 = vcombine.high %v310_v40, %v310_v40  ;;  %v391_v43 = vrot.slane %v310_v40, %v390_v37 }
 0x1c1   :  { %v442_v44 = vcombine.high %v380_v41, %v380_v41  ;;  %v449_v45 = vrot.slane %v380_v41, %v390_v37  ;;  %v2786_v41 = vld [vmem:[%s3121_s4 + $0x10] sm:$0xff]  }
 0x1c2   :  { %v398_v47 = vrot.slane %v384_v42, %v390_v37  ;;  %v399_v48 = vcombine.high %v391_v43, %v391_v43  ;;  %v407_v49 = vrot.slane %v391_v43, %v390_v37  ;;  %2097 = vmatpush3.bf16.msra.mxu1 %v2786_v41  ;;  %v2792_v42 = vld [vmem:[%s3121_s4 + $0x18] sm:$0xff]   ;;  %v2799_v43 = vld [vmem:[%s3121_s4 + $0x20] sm:$0xff]  }
 0x1c3   :  { %v456_v50 = vrot.slane %v442_v44, %v390_v37  ;;  %v457_v51 = vcombine.high %v449_v45, %v449_v45  ;;  %v465_v52 = vrot.slane %v449_v45, %v390_v37  ;;  %v611_v53 = vpop.f32.mrb[4].mxu1  ;;  %2098 = vmatprep.subr.bf16.mxu1 %v2517_v7  ;;  %v2808_v45 = vld [vmem:[%s3121_s4 + $0x28] sm:$0xff]  }
 0x1c4   :  { %v2094_v54 = vpop.f32.mrb[5].mxu1  ;;  %v421_v55 = vrot.slane %v399_v48, %v390_v37  ;;  %v414_v56 = vrot.slane %v398_v47, %v390_v37  ;;  %v400_v57 = vcombine.high %v398_v47, %v398_v47  ;;  %v429_v0 = vcombine.high %v407_v49, %v407_v49 }
 0x1c5   :  { %v458_v58 = vcombine.high %v456_v50, %v456_v50  ;;  %v494_v59 = vrot.slane %v465_v52, %v493_v46  ;;  %v614_v60 = vpop.f32.mrb[6].mxu1  ;;  %v479_v61 = vrot.slane %v457_v51, %v390_v37  ;;  %v487_v62 = vcombine.high %v465_v52, %v465_v52 }
 0x1c6   :  { %v2095_v63 = vpop.f32.mrb[7].mxu1  ;;  %v472_v1 = vrot.slane %v456_v50, %v390_v37  ;;  %v428_v2 = vrot.slane %v400_v57, %v390_v37  ;;  %v431_v14 = vcombine.high %v421_v55, %v421_v55  ;;  %v430_v19 = vcombine.high %v414_v56, %v414_v56  ;;  %2099 = vmatpush3.bf16.msra.mxu1 %v2792_v42 }
 0x1c7   :  { %v532_v3 = vsel %vm531_vm4, %v407_v49, %v494_v59  ;;  %v498_v4 = vrot.slane %v479_v61, %v493_v46  ;;  %v502_v5 = vrot.slane %v487_v62, %v493_v46  ;;  %v489_v6 = vcombine.high %v479_v61, %v479_v61  ;;  %2100 = vmatprep.subr.bf16.mxu1 %v2517_v7  ;;  %v2840_v62 = vld [vmem:[%s3120_s3 + $0x101] ss:$0 sm:$0xff] }
 0x1c8   :  { %v617_v8 = vadd.f32 %v611_v53, %v532_v3  ;;  %v510_v9 = vrot.slane %v472_v1, %v493_v46  ;;  %v486_v10 = vrot.slane %v458_v58, %v390_v37  ;;  %v488_v11 = vcombine.high %v472_v1, %v472_v1 }
 0x1c9   :  { %v2754_v12 = vsel %vm531_vm4, %v421_v55, %v498_v4  ;;  %v2757_v13 = vsel %vm531_vm4, %v429_v0, %v502_v5  ;;  %v506_v15 = vrot.slane %v489_v6, %v493_v46  ;;  %v432_v26 = vcombine.high %v428_v2, %v428_v2  ;;  %v1907_v6 = vld [vmem:[%s3119_s2 + $0x6] sm:$0x3] }
 0x1ca   :  { %2363 = vtanh.f32 %v617_v8  ;;  %v2760_v16 = vsel %vm531_vm4, %v414_v56, %v510_v9  ;;  %v514_v17 = vrot.slane %v486_v10, %v493_v46  ;;  %v518_v20 = vrot.slane %v488_v11, %v493_v46  ;;  %2101 = vmatpush3.bf16.msra.mxu1 %v2799_v43 }
 0x1cb   :  { %v2763_v18 = vsel %vm531_vm4, %v431_v14, %v506_v15  ;;  %v490_v21 = vcombine.high %v486_v10, %v486_v10  ;;  %v1911_v31 = vmul.f32 -1.442695, %v617_v8  ;;  %2102 = vmatprep.subr.bf16.mxu1 %v2517_v7 }
 0x1cc   :  { %v2766_v23 = vsel %vm531_vm4, %v428_v2, %v514_v17  ;;  %v2769_v25 = vsel %vm531_vm4, %v430_v19, %v518_v20 }
 0x1cd   :  { %v522_v27 = vrot.slane %v490_v21, %v493_v46  ;;  %2365 = vpow2.f32 %v1911_v31  ;;  %v1905_v46 = vld [vmem:[%s3119_s2 + $0x2] sm:$0x3] }
 0x1ce   :  { %2103 = vmatpush3.bf16.msra.mxu1 %v2808_v45 }
 0x1cf   :  { %v2772_v28 = vsel %vm531_vm4, %v432_v26, %v522_v27  ;;  %2128 = vmatprep.subr.bf16.mxu1 %v2517_v7 }
 0x1d4   :  { %v2364_v29 = vpop.eup %2363 }
 0x1d5   :  { %631 = vrot.lane.b32.xlu0 %v2364_v29, %s2520_s1 }
 0x1d7   :  { %v2366_v32 = vpop.eup %2365 }
 0x1d8   :  { %v621_v33 = vadd.f32 1.0, %v2366_v32 }
 0x1d9   :  { %626 = vrot.lane.b32.xlu0 %v1906_v30, %s2521_s29 }
 0x1da   :  { %2367 = vrcp.f32 %v621_v33 }
 0x1e4   :  { %v2368_v34 = vpop.eup %2367 }
 0x247   :  { %v632_v35 = vpop.permute.xlu0 %631 }
 0x248   :  { %v634_v36 = vmul.f32 %v2368_v34, %v632_v35 }
 0x24a   :  { %636 = vrot.lane.b32.xlu1 %v634_v36, %s2521_s29 }
 0x24b   :  { %v627_v37 = vpop.permute.xlu0 %626 }
 0x24c   :  { %v629_v38 = vmul.f32 %v2368_v34, %v627_v37 }
 0x2bc   :  { %v637_v39 = vpop.permute.xlu1 %636 }
 0x2bd   :  { %v2780_v40 = vadd.f32 %v637_v39, %v629_v38 }
 0x2bf   :  { %2369 = vtanh.f32 %v2780_v40 }
 0x2c9   :  { %v2370_v44 = vpop.eup %2369 }
 0x2ca   :  { %642 = vrot.lane.b32.xlu1 %v2370_v44, %s2520_s1 }
 0x33c   :  { %v643_v47 = vpop.permute.xlu1 %642 }
 0x33d   :  { %v645_v48 = vmul.f32 %v2368_v34, %v643_v47 }
 0x33f   :  { %v2352_v49 = vpack.i.bf16 %v1905_v46, %v645_v48  ;;  %v756_v50 = vpack.c.bf16 %v645_v48, %v645_v48 }
 0x341   :  { %2353 = vrot.lane.b32.xlu0 %v2352_v49, %s2521_s29  ;;  %758 = vrot.lane.b32.xlu1 %v756_v50, %s2521_s29 }
 0x3b3   :  { %v2354_v51 = vpop.permute.xlu0 %2353  ;;  %v759_v52 = vpop.permute.xlu1 %758 }
 0x3b4   :  { %v2356_v53 = vunpack.i.h.bf16 %v2354_v51  ;;  %v2355_v54 = vunpack.i.l.bf16 %v2354_v51  ;;  %2113 = vmatmul.mubr.msk.bf16.vlgmr.msra.gmra.mrb[4].mxu0 %vm573_vm3, %v759_v52 }
 0x3b5   :  { %2117 = vmatpush3.bf16.msra.mxu0 %v2786_v41  ;;  %2124 = vmatprep.mubr.msk.bf16.mxu0 %vm2518_vm2, %v2517_v7 }
 0x3b6   :  { %v654_v55 = vsel %vm573_vm3, %v2355_v54, %v2356_v53  ;;  %2118 = vmatprep.subr.bf16.mxu0 %v2517_v7 }
 0x3b7   :  { %v655_v56 = vpack.c.bf16 %v654_v55, %v654_v55 }
 0x3b9   :  { %2105 = vmatmul.mubr.msk.bf16.vlgmr.msra.gmra.mrb[8].mxu1 %vm684_vm5, %v655_v56  ;;  %2119 = vmatpush3.bf16.msra.mxu0 %v2792_v42 }
 0x3ba   :  { %2129 = vmatpush3.bf16.msra.mxu1 %v2724_v22  ;;  %2120 = vmatprep.subr.bf16.mxu0 %v2517_v7 }
 0x3bb   :  { %2130 = vmatprep.subr.bf16.mxu1 %v2517_v7  ;;  %2132 = vmatprep.mubr.msk.bf16.mxu1 %vm2518_vm2, %v2517_v7 }
 0x3bd   :  { %2121 = vmatpush3.bf16.msra.mxu0 %v2799_v43 }
 0x3be   :  { %2131 = vmatpush3.bf16.msra.mxu1 %v2731_v24  ;;  %2122 = vmatprep.subr.bf16.mxu0 %v2517_v7 }
 0x3bf   :  { %2136 = vmatprep.subr.bf16.mxu1 %v2517_v7 }
 0x3c1   :  { %2123 = vmatpush3.bf16.msra.mxu0 %v2808_v45 }
 0x3c2   :  { %2148 = vmatprep.subr.bf16.mxu0 %v2517_v7 }
 0x487   :  { %v797_v57 = vpop.f32.mrb[4].mxu0 }
 0x488   :  { %v803_v58 = vadd.f32 %v797_v57, %v2754_v12  ;;  %v2114_v59 = vpop.f32.mrb[5].mxu0 }
 0x489   :  { %v800_v60 = vpop.f32.mrb[6].mxu0 }
 0x48a   :  { %2371 = vtanh.f32 %v803_v58  ;;  %v2115_v61 = vpop.f32.mrb[7].mxu0  ;;  %v1920_v8 = vmul.f32 -1.442695, %v803_v58 }
 0x48c   :  { %v722_v63 = vpop.f32.mrb[8].mxu1 }
 0x48d   :  { %v723_v0 = vadd.f32 %v2840_v62, %v722_v63  ;;  %v2106_v1 = vpop.f32.mrb[9].mxu1 }
 0x48e   :  { %v725_v2 = vpop.f32.mrb[10].mxu1 }
 0x48f   :  { %2373 = vtanh.f32 %v723_v0  ;;  %v2107_v3 = vpop.f32.mrb[11].mxu1  ;;  %v1918_v9 = vmul.f32 -1.442695, %v723_v0 }
 0x490   :  { %2375 = vpow2.f32 %v1920_v8 }
 0x491   :  { %2377 = vpow2.f32 %v1918_v9 }
 0x494   :  { %v2372_v4 = vpop.eup %2371 }
 0x495   :  { %813 = vrot.lane.b32.xlu1 %v2372_v4, %s2520_s1 }
 0x499   :  { %v2374_v5 = vpop.eup %2373 }
 0x49a   :  { %741 = vrot.lane.b32.xlu0 %v2374_v5, %s2520_s1  ;;  %v2376_v10 = vpop.eup %2375 }
 0x49b   :  { %v807_v11 = vadd.f32 1.0, %v2376_v10  ;;  %v2378_v12 = vpop.eup %2377 }
 0x49c   :  { %v731_v14 = vadd.f32 1.0, %v2378_v12 }
 0x49d   :  { %2379 = vrcp.f32 %v807_v11 }
 0x49e   :  { %736 = vrot.lane.b32.xlu0 %v1907_v6, %s2521_s29  ;;  %2381 = vrcp.f32 %v731_v14 }
 0x4a7   :  { %v2380_v15 = vpop.eup %2379 }
 0x4a8   :  { %v2382_v20 = vpop.eup %2381  ;;  %v811_v29 = vmul.f32 %v2380_v15, %v2780_v40 }
 0x507   :  { %v814_v17 = vpop.permute.xlu1 %813 }
 0x508   :  { %v816_v19 = vmul.f32 %v2380_v15, %v814_v17 }
 0x50a   :  { %818 = vrot.lane.b32.xlu0 %v816_v19, %s2521_s29 }
 0x50c   :  { %v742_v21 = vpop.permute.xlu0 %741 }
 0x50d   :  { %v744_v26 = vmul.f32 %v2382_v20, %v742_v21 }
 0x50f   :  { %746 = vrot.lane.b32.xlu1 %v744_v26, %s2521_s29 }
 0x510   :  { %v737_v27 = vpop.permute.xlu0 %736 }
 0x511   :  { %v739_v32 = vmul.f32 %v2382_v20, %v737_v27 }
 0x57c   :  { %v819_v30 = vpop.permute.xlu0 %818 }
 0x57d   :  { %v2852_v31 = vadd.f32 %v819_v30, %v811_v29 }
 0x57f   :  { %2383 = vtanh.f32 %v2852_v31 }
 0x581   :  { %v747_v33 = vpop.permute.xlu1 %746 }
 0x582   :  { %v2855_v34 = vadd.f32 %v747_v33, %v739_v32 }
 0x584   :  { %2385 = vtanh.f32 %v2855_v34 }
 0x589   :  { %v2384_v35 = vpop.eup %2383 }
 0x58a   :  { %824 = vrot.lane.b32.xlu0 %v2384_v35, %s2520_s1 }
 0x58e   :  { %v2386_v36 = vpop.eup %2385 }
 0x58f   :  { %752 = vrot.lane.b32.xlu1 %v2386_v36, %s2520_s1 }
 0x5fc   :  { %v825_v37 = vpop.permute.xlu0 %824 }
 0x5fd   :  { %v827_v38 = vmul.f32 %v2380_v15, %v825_v37 }
 0x5ff   :  { %829 = vrot.lane.b32.xlu1 %v827_v38, %s2521_s29  ;;  %v905_v39 = vpack.c.bf16 %v827_v38, %v827_v38 }
 0x601   :  { %v753_v40 = vpop.permute.xlu1 %752 }
 0x602   :  { %v755_v44 = vmul.f32 %v2382_v20, %v753_v40 }
 0x603   :  { %907 = vrot.lane.b32.xlu1 %v905_v39, %s2521_s29 }
 0x604   :  { %833 = vrot.lane.b32.xlu0 %v755_v44, %s2520_s1 }
 0x671   :  { %v830_v46 = vpop.permute.xlu1 %829 }
 0x675   :  { %v908_v47 = vpop.permute.xlu1 %907 }
 0x676   :  { %2133 = vmatmul.mubr.msk.bf16.vlgmr.msra.gmra.mrb[12].mxu1 %vm573_vm3, %v908_v47  ;;  %v834_v48 = vpop.permute.xlu0 %833 }
 0x677   :  { %v836_v49 = vsel %vm573_vm3, %v830_v46, %v834_v48  ;;  %2137 = vmatpush3.bf16.msra.mxu1 %v2786_v41  ;;  %2144 = vmatprep.mubr.msk.bf16.mxu1 %vm2518_vm2, %v2517_v7 }
 0x678   :  { %v837_v50 = vpack.c.bf16 %v836_v49, %v836_v49  ;;  %2138 = vmatprep.subr.bf16.mxu1 %v2517_v7 }
 0x67a   :  { %2125 = vmatmul.mubr.msk.bf16.vlgmr.msra.gmra.mrb[8].mxu0 %vm684_vm5, %v837_v50 }
 0x67b   :  { %2139 = vmatpush3.bf16.msra.mxu1 %v2792_v42  ;;  %2149 = vmatpush3.bf16.msra.mxu0 %v2724_v22 }
 0x67c   :  { %2140 = vmatprep.subr.bf16.mxu1 %v2517_v7  ;;  %2150 = vmatprep.subr.bf16.mxu0 %v2517_v7 }
 0x67d   :  { %2152 = vmatprep.mubr.msk.bf16.mxu0 %vm2518_vm2, %v2517_v7 }
 0x67f   :  { %2141 = vmatpush3.bf16.msra.mxu1 %v2799_v43  ;;  %2151 = vmatpush3.bf16.msra.mxu0 %v2731_v24 }
 0x680   :  { %2142 = vmatprep.subr.bf16.mxu1 %v2517_v7  ;;  %2156 = vmatprep.subr.bf16.mxu0 %v2517_v7 }
 0x683   :  { %2143 = vmatpush3.bf16.msra.mxu1 %v2808_v45 }
 0x684   :  { %2168 = vmatprep.subr.bf16.mxu1 %v2517_v7 }
 0x749   :  { %v946_v51 = vpop.f32.mrb[12].mxu1 }
 0x74a   :  { %v952_v52 = vadd.f32 %v946_v51, %v2757_v13  ;;  %v2134_v53 = vpop.f32.mrb[13].mxu1 }
 0x74b   :  { %v949_v54 = vpop.f32.mrb[14].mxu1 }
 0x74c   :  { %2387 = vtanh.f32 %v952_v52  ;;  %v2135_v55 = vpop.f32.mrb[15].mxu1  ;;  %v1924_v0 = vmul.f32 -1.442695, %v952_v52 }
 0x74d   :  { %v875_v56 = vpop.f32.mrb[8].mxu0 }
 0x74e   :  { %v876_v57 = vadd.f32 %v2840_v62, %v875_v56  ;;  %v2126_v58 = vpop.f32.mrb[9].mxu0 }
 0x74f   :  { %v878_v59 = vpop.f32.mrb[10].mxu0 }
 0x750   :  { %2389 = vtanh.f32 %v876_v57  ;;  %v2127_v60 = vpop.f32.mrb[11].mxu0  ;;  %v1922_v13 = vmul.f32 -1.442695, %v876_v57 }
 0x751   :  { %2391 = vpow2.f32 %v1924_v0 }
 0x752   :  { %2393 = vpow2.f32 %v1922_v13 }
 0x756   :  { %v2388_v61 = vpop.eup %2387 }
 0x757   :  { %962 = vrot.lane.b32.xlu1 %v2388_v61, %s2520_s1 }
 0x75a   :  { %v2390_v63 = vpop.eup %2389 }
 0x75b   :  { %890 = vrot.lane.b32.xlu0 %v2390_v63, %s2520_s1  ;;  %v2392_v1 = vpop.eup %2391 }
 0x75c   :  { %v956_v2 = vadd.f32 1.0, %v2392_v1  ;;  %v2394_v3 = vpop.eup %2393 }
 0x75d   :  { %v884_v4 = vadd.f32 1.0, %v2394_v3 }
 0x75e   :  { %2395 = vrcp.f32 %v956_v2 }
 0x75f   :  { %2397 = vrcp.f32 %v884_v4 }
 0x768   :  { %v2396_v5 = vpop.eup %2395 }
 0x769   :  { %v2398_v9 = vpop.eup %2397  ;;  %v960_v12 = vmul.f32 %v2396_v5, %v2852_v31 }
 0x76a   :  { %v888_v17 = vmul.f32 %v2398_v9, %v2855_v34 }
 0x7c9   :  { %v963_v6 = vpop.permute.xlu1 %962 }
 0x7ca   :  { %v965_v8 = vmul.f32 %v2396_v5, %v963_v6 }
 0x7cc   :  { %967 = vrot.lane.b32.xlu1 %v965_v8, %s2521_s29 }
 0x7cd   :  { %v891_v10 = vpop.permute.xlu0 %890 }
 0x7ce   :  { %v893_v11 = vmul.f32 %v2398_v9, %v891_v10 }
 0x7d0   :  { %895 = vrot.lane.b32.xlu0 %v893_v11, %s2521_s29 }
 0x83e   :  { %v968_v14 = vpop.permute.xlu1 %967 }
 0x83f   :  { %v2889_v15 = vadd.f32 %v968_v14, %v960_v12 }
 0x841   :  { %2399 = vtanh.f32 %v2889_v15 }
 0x842   :  { %v896_v19 = vpop.permute.xlu0 %895 }
 0x843   :  { %v2893_v20 = vadd.f32 %v896_v19, %v888_v17 }
 0x845   :  { %2401 = vtanh.f32 %v2893_v20 }
 0x84b   :  { %v2400_v21 = vpop.eup %2399 }
 0x84c   :  { %973 = vrot.lane.b32.xlu1 %v2400_v21, %s2520_s1 }
 0x84f   :  { %v2402_v26 = vpop.eup %2401 }
 0x850   :  { %901 = vrot.lane.b32.xlu0 %v2402_v26, %s2520_s1 }
 0x8be   :  { %v974_v27 = vpop.permute.xlu1 %973 }
 0x8bf   :  { %v976_v29 = vmul.f32 %v2396_v5, %v974_v27 }
 0x8c1   :  { %978 = vrot.lane.b32.xlu0 %v976_v29, %s2521_s29  ;;  %v1054_v31 = vpack.c.bf16 %v976_v29, %v976_v29 }
 0x8c2   :  { %v902_v30 = vpop.permute.xlu0 %901 }
 0x8c3   :  { %v904_v32 = vmul.f32 %v2398_v9, %v902_v30 }
 0x8c5   :  { %1056 = vrot.lane.b32.xlu0 %v1054_v31, %s2521_s29  ;;  %982 = vrot.lane.b32.xlu1 %v904_v32, %s2520_s1 }
 0x933   :  { %v979_v33 = vpop.permute.xlu0 %978 }
 0x937   :  { %v983_v34 = vpop.permute.xlu1 %982  ;;  %v1057_v35 = vpop.permute.xlu0 %1056 }
 0x938   :  { %v985_v36 = vsel %vm573_vm3, %v979_v33, %v983_v34  ;;  %2153 = vmatmul.mubr.msk.bf16.vlgmr.msra.gmra.mrb[12].mxu0 %vm573_vm3, %v1057_v35 }
 0x939   :  { %v986_v37 = vpack.c.bf16 %v985_v36, %v985_v36  ;;  %2157 = vmatpush3.bf16.msra.mxu0 %v2786_v41  ;;  %2164 = vmatprep.mubr.msk.bf16.mxu0 %vm2518_vm2, %v2517_v7 }
 0x93a   :  { %2158 = vmatprep.subr.bf16.mxu0 %v2517_v7 }
 0x93b   :  { %2145 = vmatmul.mubr.msk.bf16.vlgmr.msra.gmra.mrb[16].mxu1 %vm684_vm5, %v986_v37 }
 0x93c   :  { %2169 = vmatpush3.bf16.msra.mxu1 %v2724_v22  ;;  %2172 = vmatprep.mubr.msk.bf16.mxu1 %vm2518_vm2, %v2517_v7 }
 0x93d   :  { %2159 = vmatpush3.bf16.msra.mxu0 %v2792_v42  ;;  %2170 = vmatprep.subr.bf16.mxu1 %v2517_v7 }
 0x93e   :  { %2160 = vmatprep.subr.bf16.mxu0 %v2517_v7 }
 0x940   :  { %2171 = vmatpush3.bf16.msra.mxu1 %v2731_v24 }
 0x941   :  { %2161 = vmatpush3.bf16.msra.mxu0 %v2799_v43  ;;  %2176 = vmatprep.subr.bf16.mxu1 %v2517_v7 }
 0x942   :  { %2162 = vmatprep.subr.bf16.mxu0 %v2517_v7 }
 0x945   :  { %2163 = vmatpush3.bf16.msra.mxu0 %v2808_v45 }
 0x946   :  { %2188 = vmatprep.subr.bf16.mxu0 %v2517_v7 }
 0xa0b   :  { %v1095_v38 = vpop.f32.mrb[12].mxu0 }
 0xa0c   :  { %v1101_v39 = vadd.f32 %v1095_v38, %v2763_v18  ;;  %v2154_v40 = vpop.f32.mrb[13].mxu0 }
 0xa0d   :  { %v1098_v44 = vpop.f32.mrb[14].mxu0 }
 0xa0e   :  { %2403 = vtanh.f32 %v1101_v39  ;;  %v1024_v46 = vpop.f32.mrb[16].mxu1  ;;  %v2155_v47 = vpop.f32.mrb[15].mxu0  ;;  %v1928_v54 = vmul.f32 -1.442695, %v1101_v39 }
 0xa0f   :  { %v1025_v48 = vadd.f32 %v2840_v62, %v1024_v46  ;;  %v2146_v49 = vpop.f32.mrb[17].mxu1 }
 0xa10   :  { %v1027_v50 = vpop.f32.mrb[18].mxu1 }
 0xa11   :  { %2405 = vtanh.f32 %v1025_v48  ;;  %v2147_v51 = vpop.f32.mrb[19].mxu1  ;;  %v1926_v55 = vmul.f32 -1.442695, %v1025_v48 }
 0xa12   :  { %2407 = vpow2.f32 %v1928_v54 }
 0xa13   :  { %2409 = vpow2.f32 %v1926_v55 }
 0xa18   :  { %v2404_v52 = vpop.eup %2403 }
 0xa19   :  { %1111 = vrot.lane.b32.xlu0 %v2404_v52, %s2520_s1 }
 0xa1b   :  { %v2406_v53 = vpop.eup %2405 }
 0xa1c   :  { %1039 = vrot.lane.b32.xlu1 %v2406_v53, %s2520_s1  ;;  %v2408_v18 = vpop.eup %2407 }
 0xa1d   :  { %v2410_v56 = vpop.eup %2409  ;;  %v1105_v57 = vadd.f32 1.0, %v2408_v18 }
 0xa1e   :  { %v1033_v58 = vadd.f32 1.0, %v2410_v56 }
 0xa1f   :  { %2411 = vrcp.f32 %v1105_v57 }
 0xa20   :  { %2413 = vrcp.f32 %v1033_v58 }
 0xa29   :  { %v2412_v59 = vpop.eup %2411 }
 0xa2a   :  { %v2414_v63 = vpop.eup %2413  ;;  %v1109_v1 = vmul.f32 %v2412_v59, %v2889_v15 }
 0xa2b   :  { %v1037_v4 = vmul.f32 %v2414_v63, %v2893_v20 }
 0xa8b   :  { %v1112_v60 = vpop.permute.xlu0 %1111 }
 0xa8c   :  { %v1114_v61 = vmul.f32 %v2412_v59, %v1112_v60 }
 0xa8e   :  { %v1040_v0 = vpop.permute.xlu1 %1039  ;;  %1116 = vrot.lane.b32.xlu0 %v1114_v61, %s2521_s29 }
 0xa8f   :  { %v1042_v13 = vmul.f32 %v2414_v63, %v1040_v0 }
 0xa91   :  { %1044 = vrot.lane.b32.xlu1 %v1042_v13, %s2521_s29 }
 0xb00   :  { %v1117_v2 = vpop.permute.xlu0 %1116 }
 0xb01   :  { %v2927_v3 = vadd.f32 %v1117_v2, %v1109_v1 }
 0xb03   :  { %2415 = vtanh.f32 %v2927_v3  ;;  %v1045_v5 = vpop.permute.xlu1 %1044 }
 0xb04   :  { %v2931_v6 = vadd.f32 %v1045_v5, %v1037_v4 }
 0xb06   :  { %2417 = vtanh.f32 %v2931_v6 }
 0xb0d   :  { %v2416_v8 = vpop.eup %2415 }
 0xb0e   :  { %1122 = vrot.lane.b32.xlu0 %v2416_v8, %s2520_s1 }
 0xb10   :  { %v2418_v9 = vpop.eup %2417 }
 0xb11   :  { %1050 = vrot.lane.b32.xlu1 %v2418_v9, %s2520_s1 }
 0xb80   :  { %v1123_v10 = vpop.permute.xlu0 %1122 }
 0xb81   :  { %v1125_v11 = vmul.f32 %v2412_v59, %v1123_v10 }
 0xb83   :  { %v1051_v12 = vpop.permute.xlu1 %1050  ;;  %1127 = vrot.lane.b32.xlu1 %v1125_v11, %s2521_s29  ;;  %v1203_v15 = vpack.c.bf16 %v1125_v11, %v1125_v11 }
 0xb84   :  { %v1053_v14 = vmul.f32 %v2414_v63, %v1051_v12 }
 0xb86   :  { %1131 = vrot.lane.b32.xlu0 %v1053_v14, %s2520_s1 }
 0xb87   :  { %1205 = vrot.lane.b32.xlu1 %v1203_v15, %s2521_s29 }
 0xbf5   :  { %v1128_v17 = vpop.permute.xlu1 %1127 }
 0xbf8   :  { %v1132_v19 = vpop.permute.xlu0 %1131 }
 0xbf9   :  { %v1134_v20 = vsel %vm573_vm3, %v1128_v17, %v1132_v19  ;;  %v1206_v21 = vpop.permute.xlu1 %1205 }
 0xbfa   :  { %v1135_v26 = vpack.c.bf16 %v1134_v20, %v1134_v20  ;;  %2173 = vmatmul.mubr.msk.bf16.vlgmr.msra.gmra.mrb[20].mxu1 %vm573_vm3, %v1206_v21 }
 0xbfb   :  { %2177 = vmatpush3.bf16.msra.mxu1 %v2786_v41  ;;  %2184 = vmatprep.mubr.msk.bf16.mxu1 %vm2518_vm2, %v2517_v7 }
 0xbfc   :  { %2165 = vmatmul.mubr.msk.bf16.vlgmr.msra.gmra.mrb[16].mxu0 %vm684_vm5, %v1135_v26  ;;  %2178 = vmatprep.subr.bf16.mxu1 %v2517_v7 }
 0xbfd   :  { %2189 = vmatpush3.bf16.msra.mxu0 %v2724_v22  ;;  %2192 = vmatprep.mubr.msk.bf16.mxu0 %vm2518_vm2, %v2517_v7 }
 0xbfe   :  { %2190 = vmatprep.subr.bf16.mxu0 %v2517_v7 }
 0xbff   :  { %2179 = vmatpush3.bf16.msra.mxu1 %v2792_v42 }
 0xc00   :  { %2180 = vmatprep.subr.bf16.mxu1 %v2517_v7 }
 0xc01   :  { %2191 = vmatpush3.bf16.msra.mxu0 %v2731_v24 }
 0xc02   :  { %2196 = vmatprep.subr.bf16.mxu0 %v2517_v7 }
 0xc03   :  { %2181 = vmatpush3.bf16.msra.mxu1 %v2799_v43 }
 0xc04   :  { %2182 = vmatprep.subr.bf16.mxu1 %v2517_v7 }
 0xc07   :  { %2183 = vmatpush3.bf16.msra.mxu1 %v2808_v45 }
 0xc08   :  { %2208 = vmatprep.subr.bf16.mxu1 %v2517_v7 }
 0xccd   :  { %v1244_v27 = vpop.f32.mrb[20].mxu1 }
 0xcce   :  { %v1250_v29 = vadd.f32 %v1244_v27, %v2760_v16  ;;  %v2174_v30 = vpop.f32.mrb[21].mxu1 }
 0xccf   :  { %v1173_v31 = vpop.f32.mrb[16].mxu0  ;;  %v1247_v32 = vpop.f32.mrb[22].mxu1 }
 0xcd0   :  { %2419 = vtanh.f32 %v1250_v29  ;;  %v1174_v33 = vadd.f32 %v2840_v62, %v1173_v31  ;;  %v2166_v34 = vpop.f32.mrb[17].mxu0  ;;  %v2175_v35 = vpop.f32.mrb[23].mxu1  ;;  %v1932_v40 = vmul.f32 -1.442695, %v1250_v29 }
 0xcd1   :  { %v1176_v36 = vpop.f32.mrb[18].mxu0 }
 0xcd2   :  { %v2167_v37 = vpop.f32.mrb[19].mxu0  ;;  %2421 = vtanh.f32 %v1174_v33  ;;  %v1930_v44 = vmul.f32 -1.442695, %v1174_v33 }
 0xcd3   :  { %2423 = vpow2.f32 %v1932_v40 }
 0xcd4   :  { %2425 = vpow2.f32 %v1930_v44 }
 0xcda   :  { %v2420_v38 = vpop.eup %2419 }
 0xcdb   :  { %1260 = vrot.lane.b32.xlu1 %v2420_v38, %s2520_s1 }
 0xcdc   :  { %v2422_v39 = vpop.eup %2421 }
 0xcdd   :  { %1188 = vrot.lane.b32.xlu0 %v2422_v39, %s2520_s1  ;;  %v2424_v16 = vpop.eup %2423 }
 0xcde   :  { %v2426_v46 = vpop.eup %2425  ;;  %v1254_v47 = vadd.f32 1.0, %v2424_v16 }
 0xcdf   :  { %v1182_v48 = vadd.f32 1.0, %v2426_v46 }
 0xce0   :  { %2427 = vrcp.f32 %v1254_v47 }
 0xce1   :  { %2429 = vrcp.f32 %v1182_v48 }
 0xcea   :  { %v2428_v49 = vpop.eup %2427 }
 0xceb   :  { %v2430_v52 = vpop.eup %2429  ;;  %v1258_v55 = vmul.f32 %v2428_v49, %v2927_v3 }
 0xcec   :  { %v1186_v57 = vmul.f32 %v2430_v52, %v2931_v6 }
 0xd4d   :  { %v1261_v50 = vpop.permute.xlu1 %1260 }
 0xd4e   :  { %v1263_v51 = vmul.f32 %v2428_v49, %v1261_v50 }
 0xd4f   :  { %v1189_v53 = vpop.permute.xlu0 %1188 }
 0xd50   :  { %1265 = vrot.lane.b32.xlu1 %v1263_v51, %s2521_s29  ;;  %v1191_v54 = vmul.f32 %v2430_v52, %v1189_v53 }
 0xd52   :  { %1193 = vrot.lane.b32.xlu0 %v1191_v54, %s2521_s29 }
 0xdc2   :  { %v1266_v18 = vpop.permute.xlu1 %1265 }
 0xdc3   :  { %v2965_v56 = vadd.f32 %v1266_v18, %v1258_v55 }
 0xdc4   :  { %v1194_v58 = vpop.permute.xlu0 %1193 }
 0xdc5   :  { %2431 = vtanh.f32 %v2965_v56  ;;  %v2969_v59 = vadd.f32 %v1194_v58, %v1186_v57  ;;  %v2491_v58 = vld [vmem:[%s3121_s4] sm:$0xff]  }
 0xdc7   :  { %2433 = vtanh.f32 %v2969_v59 }
 0xdcf   :  { %v2432_v60 = vpop.eup %2431 }
 0xdd0   :  { %1271 = vrot.lane.b32.xlu1 %v2432_v60, %s2520_s1 }
 0xdd1   :  { %v2434_v61 = vpop.eup %2433 }
 0xdd2   :  { %1199 = vrot.lane.b32.xlu0 %v2434_v61, %s2520_s1 }
 0xe42   :  { %v1272_v63 = vpop.permute.xlu1 %1271 }
 0xe43   :  { %v1274_v0 = vmul.f32 %v2428_v49, %v1272_v63 }
 0xe44   :  { %v1200_v13 = vpop.permute.xlu0 %1199 }
 0xe45   :  { %1276 = vrot.lane.b32.xlu0 %v1274_v0, %s2521_s29  ;;  %v1202_v1 = vmul.f32 %v2430_v52, %v1200_v13  ;;  %v1352_v2 = vpack.c.bf16 %v1274_v0, %v1274_v0 }
 0xe47   :  { %1280 = vrot.lane.b32.xlu1 %v1202_v1, %s2520_s1 }
 0xe49   :  { %1354 = vrot.lane.b32.xlu0 %v1352_v2, %s2521_s29 }
 0xeb7   :  { %v1277_v3 = vpop.permute.xlu0 %1276 }
 0xeb9   :  { %v1281_v4 = vpop.permute.xlu1 %1280 }
 0xeba   :  { %v1283_v5 = vsel %vm573_vm3, %v1277_v3, %v1281_v4 }
 0xebb   :  { %v1355_v6 = vpop.permute.xlu0 %1354  ;;  %v1284_v8 = vpack.c.bf16 %v1283_v5, %v1283_v5 }
 0xebc   :  { %2193 = vmatmul.mubr.msk.bf16.vlgmr.msra.gmra.mrb[20].mxu0 %vm573_vm3, %v1355_v6 }
 0xebd   :  { %2197 = vmatpush3.bf16.msra.mxu0 %v2786_v41  ;;  %2204 = vmatprep.mubr.msk.bf16.mxu0 %vm2518_vm2, %v2517_v7 }
 0xebe   :  { %2185 = vmatmul.mubr.msk.bf16.vlgmr.msra.gmra.mrb[24].mxu1 %vm684_vm5, %v1284_v8  ;;  %2198 = vmatprep.subr.bf16.mxu0 %v2517_v7 }
 0xebf   :  { %2209 = vmatpush3.bf16.msra.mxu1 %v2724_v22  ;;  %2212 = vmatprep.mubr.msk.bf16.mxu1 %vm2518_vm2, %v2517_v7 }
 0xec0   :  { %2210 = vmatprep.subr.bf16.mxu1 %v2517_v7 }
 0xec1   :  { %2199 = vmatpush3.bf16.msra.mxu0 %v2792_v42 }
 0xec2   :  { %2200 = vmatprep.subr.bf16.mxu0 %v2517_v7 }
 0xec3   :  { %2211 = vmatpush3.bf16.msra.mxu1 %v2731_v24 }
 0xec4   :  { %2216 = vmatprep.subr.bf16.mxu1 %v2517_v7 }
 0xec5   :  { %2201 = vmatpush3.bf16.msra.mxu0 %v2799_v43 }
 0xec6   :  { %2202 = vmatprep.subr.bf16.mxu0 %v2517_v7 }
 0xec9   :  { %2203 = vmatpush3.bf16.msra.mxu0 %v2808_v45 }
 0xeca   :  { %2228 = vmatprep.subr.bf16.mxu0 %v2517_v7 }
 0xf8f   :  { %v1393_v22 = vpop.f32.mrb[20].mxu0 }
 0xf90   :  { %v1399_v9 = vadd.f32 %v1393_v22, %v2766_v23  ;;  %v2194_v10 = vpop.f32.mrb[21].mxu0 }
 0xf91   :  { %v1322_v11 = vpop.f32.mrb[24].mxu1  ;;  %v1396_v12 = vpop.f32.mrb[22].mxu0 }
 0xf92   :  { %2435 = vtanh.f32 %v1399_v9  ;;  %v1323_v14 = vadd.f32 %v2840_v62, %v1322_v11  ;;  %v2186_v24 = vpop.f32.mrb[25].mxu1  ;;  %v2195_v15 = vpop.f32.mrb[23].mxu0  ;;  %v1936_v26 = vmul.f32 -1.442695, %v1399_v9 }
 0xf93   :  { %v1325_v17 = vpop.f32.mrb[26].mxu1 }
 0xf94   :  { %v2187_v19 = vpop.f32.mrb[27].mxu1  ;;  %2437 = vtanh.f32 %v1323_v14  ;;  %v1934_v27 = vmul.f32 -1.442695, %v1323_v14 }
 0xf95   :  { %2439 = vpow2.f32 %v1936_v26 }
 0xf96   :  { %2441 = vpow2.f32 %v1934_v27 }
 0xf9c   :  { %v2436_v20 = vpop.eup %2435 }
 0xf9d   :  { %1409 = vrot.lane.b32.xlu0 %v2436_v20, %s2520_s1 }
 0xf9e   :  { %v2438_v21 = vpop.eup %2437 }
 0xf9f   :  { %1337 = vrot.lane.b32.xlu1 %v2438_v21, %s2520_s1  ;;  %v2440_v23 = vpop.eup %2439 }
 0xfa0   :  { %v2442_v29 = vpop.eup %2441  ;;  %v1403_v30 = vadd.f32 1.0, %v2440_v23 }
 0xfa1   :  { %v1331_v31 = vadd.f32 1.0, %v2442_v29 }
 0xfa2   :  { %2443 = vrcp.f32 %v1403_v30 }
 0xfa3   :  { %2445 = vrcp.f32 %v1331_v31 }
 0xfac   :  { %v2444_v32 = vpop.eup %2443 }
 0xfad   :  { %v2446_v35 = vpop.eup %2445  ;;  %v1407_v38 = vmul.f32 %v2444_v32, %v2965_v56 }
 0xfae   :  { %v1335_v44 = vmul.f32 %v2446_v35, %v2969_v59  ;;  %v2492_v59 = vld [vmem:[%s3121_s4 + $0x8] sm:$0xff]  }
0x100f   :  { %v1410_v33 = vpop.permute.xlu0 %1409 }
0x1010   :  { %v1412_v34 = vmul.f32 %v2444_v32, %v1410_v33 }
0x1011   :  { %v1338_v36 = vpop.permute.xlu1 %1337 }
0x1012   :  { %1414 = vrot.lane.b32.xlu0 %v1412_v34, %s2521_s29  ;;  %v1340_v37 = vmul.f32 %v2446_v35, %v1338_v36 }
0x1014   :  { %1342 = vrot.lane.b32.xlu1 %v1340_v37, %s2521_s29 }
0x1084   :  { %v1415_v39 = vpop.permute.xlu0 %1414 }
0x1085   :  { %v3003_v40 = vadd.f32 %v1415_v39, %v1407_v38 }
0x1086   :  { %v1343_v16 = vpop.permute.xlu1 %1342 }
0x1087   :  { %2447 = vtanh.f32 %v3003_v40  ;;  %v3007_v46 = vadd.f32 %v1343_v16, %v1335_v44 }
0x1089   :  { %2449 = vtanh.f32 %v3007_v46 }
0x1091   :  { %v2448_v47 = vpop.eup %2447 }
0x1092   :  { %1420 = vrot.lane.b32.xlu0 %v2448_v47, %s2520_s1 }
0x1093   :  { %v2450_v48 = vpop.eup %2449 }
0x1094   :  { %1348 = vrot.lane.b32.xlu1 %v2450_v48, %s2520_s1 }
0x1104   :  { %v1421_v49 = vpop.permute.xlu0 %1420 }
0x1105   :  { %v1423_v50 = vmul.f32 %v2444_v32, %v1421_v49 }
0x1106   :  { %v1349_v51 = vpop.permute.xlu1 %1348 }
0x1107   :  { %1425 = vrot.lane.b32.xlu1 %v1423_v50, %s2521_s29  ;;  %v1351_v52 = vmul.f32 %v2446_v35, %v1349_v51  ;;  %v1501_v53 = vpack.c.bf16 %v1423_v50, %v1423_v50 }
0x1109   :  { %1429 = vrot.lane.b32.xlu0 %v1351_v52, %s2520_s1 }
0x110b   :  { %1503 = vrot.lane.b32.xlu1 %v1501_v53, %s2521_s29 }
0x1179   :  { %v1426_v54 = vpop.permute.xlu1 %1425 }
0x117b   :  { %v1430_v55 = vpop.permute.xlu0 %1429 }
0x117c   :  { %v1432_v18 = vsel %vm573_vm3, %v1426_v54, %v1430_v55 }
0x117d   :  { %v1504_v56 = vpop.permute.xlu1 %1503  ;;  %v1433_v57 = vpack.c.bf16 %v1432_v18, %v1432_v18 }
0x117e   :  { %2213 = vmatmul.mubr.msk.bf16.vlgmr.msra.gmra.mrb[28].mxu1 %vm573_vm3, %v1504_v56 }
0x117f   :  { %2217 = vmatpush3.bf16.msra.mxu1 %v2786_v41  ;;  %2224 = vmatprep.mubr.msk.bf16.mxu1 %vm2518_vm2, %v2517_v7 }
0x1180   :  { %2205 = vmatmul.mubr.msk.bf16.vlgmr.msra.gmra.mrb[24].mxu0 %vm684_vm5, %v1433_v57  ;;  %2218 = vmatprep.subr.bf16.mxu1 %v2517_v7 }
0x1181   :  { %2229 = vmatpush3.bf16.msra.mxu0 %v2491_v58  ;;  %2232 = vmatprep.mubr.msk.bf16.mxu0 %vm2518_vm2, %v2517_v7 }
0x1182   :  { %2230 = vmatprep.subr.bf16.mxu0 %v2517_v7 }
0x1183   :  { %2219 = vmatpush3.bf16.msra.mxu1 %v2792_v42 }
0x1184   :  { %2220 = vmatprep.subr.bf16.mxu1 %v2517_v7 }
0x1185   :  { %2231 = vmatpush3.bf16.msra.mxu0 %v2492_v59 }
0x1186   :  { %2236 = vmatprep.subr.bf16.mxu0 %v2517_v7 }
0x1187   :  { %2221 = vmatpush3.bf16.msra.mxu1 %v2799_v43 }
0x1188   :  { %2222 = vmatprep.subr.bf16.mxu1 %v2517_v7 }
0x118b   :  { %2223 = vmatpush3.bf16.msra.mxu1 %v2808_v45 }
0x1251   :  { %v1542_v60 = vpop.f32.mrb[28].mxu1 }
0x1252   :  { %v1548_v61 = vadd.f32 %v1542_v60, %v2769_v25  ;;  %v2214_v63 = vpop.f32.mrb[29].mxu1 }
0x1253   :  { %v1471_v0 = vpop.f32.mrb[24].mxu0  ;;  %v1545_v13 = vpop.f32.mrb[30].mxu1 }
0x1254   :  { %v1472_v1 = vadd.f32 %v2840_v62, %v1471_v0  ;;  %2451 = vtanh.f32 %v1548_v61  ;;  %v2206_v2 = vpop.f32.mrb[25].mxu0  ;;  %v2215_v3 = vpop.f32.mrb[31].mxu1  ;;  %v1940_v22 = vmul.f32 -1.442695, %v1548_v61 }
0x1255   :  { %v1474_v4 = vpop.f32.mrb[26].mxu0 }
0x1256   :  { %2453 = vtanh.f32 %v1472_v1  ;;  %v2207_v5 = vpop.f32.mrb[27].mxu0  ;;  %v1938_v9 = vmul.f32 -1.442695, %v1472_v1 }
0x1257   :  { %2455 = vpow2.f32 %v1940_v22 }
0x1258   :  { %2457 = vpow2.f32 %v1938_v9 }
0x125e   :  { %v2452_v6 = vpop.eup %2451 }
0x125f   :  { %1558 = vrot.lane.b32.xlu1 %v2452_v6, %s2520_s1 }
0x1260   :  { %v2454_v8 = vpop.eup %2453 }
0x1261   :  { %1486 = vrot.lane.b32.xlu0 %v2454_v8, %s2520_s1  ;;  %v2456_v25 = vpop.eup %2455 }
0x1262   :  { %v2458_v10 = vpop.eup %2457  ;;  %v1552_v11 = vadd.f32 1.0, %v2456_v25 }
0x1263   :  { %v1480_v12 = vadd.f32 1.0, %v2458_v10 }
0x1264   :  { %2459 = vrcp.f32 %v1552_v11 }
0x1265   :  { %2461 = vrcp.f32 %v1480_v12 }
0x126e   :  { %v2460_v14 = vpop.eup %2459 }
0x126f   :  { %v2462_v17 = vpop.eup %2461  ;;  %v1556_v21 = vmul.f32 %v2460_v14, %v3003_v40 }
0x1270   :  { %v1484_v23 = vmul.f32 %v2462_v17, %v3007_v46 }
0x12d1   :  { %v1559_v24 = vpop.permute.xlu1 %1558 }
0x12d2   :  { %v1561_v15 = vmul.f32 %v2460_v14, %v1559_v24 }
0x12d3   :  { %v1487_v19 = vpop.permute.xlu0 %1486 }
0x12d4   :  { %v1489_v20 = vmul.f32 %v2462_v17, %v1487_v19  ;;  %1563 = vrot.lane.b32.xlu1 %v1561_v15, %s2521_s29 }
0x12d6   :  { %1491 = vrot.lane.b32.xlu0 %v1489_v20, %s2521_s29 }
0x1346   :  { %v1564_v26 = vpop.permute.xlu1 %1563 }
0x1347   :  { %v3044_v27 = vadd.f32 %v1564_v26, %v1556_v21 }
0x1348   :  { %v1492_v29 = vpop.permute.xlu0 %1491 }
0x1349   :  { %2463 = vtanh.f32 %v3044_v27  ;;  %v3048_v30 = vadd.f32 %v1492_v29, %v1484_v23 }
0x134b   :  { %2465 = vtanh.f32 %v3048_v30 }
0x1353   :  { %v2464_v31 = vpop.eup %2463 }
0x1354   :  { %1569 = vrot.lane.b32.xlu1 %v2464_v31, %s2520_s1 }
0x1355   :  { %v2466_v32 = vpop.eup %2465 }
0x1356   :  { %1497 = vrot.lane.b32.xlu0 %v2466_v32, %s2520_s1 }
0x13c6   :  { %v1570_v33 = vpop.permute.xlu1 %1569 }
0x13c7   :  { %v1572_v34 = vmul.f32 %v2460_v14, %v1570_v33 }
0x13c8   :  { %v1498_v35 = vpop.permute.xlu0 %1497 }
0x13c9   :  { %v1500_v36 = vmul.f32 %v2462_v17, %v1498_v35  ;;  %1574 = vrot.lane.b32.xlu0 %v1572_v34, %s2521_s29  ;;  %v1650_v37 = vpack.c.bf16 %v1572_v34, %v1572_v34  ;;  %v1799_v34 = vld [vmem:[%s3120_s3 + $0x108] sm:$0xff]  ;;  %v1800_v35 = vld [vmem:[%s3120_s3 + $0x110] sm:$0xff] }
0x13cb   :  { %1578 = vrot.lane.b32.xlu1 %v1500_v36, %s2520_s1  ;;  %v1801_v36 = vld [vmem:[%s3120_s3 + $0x118] sm:$0xff] }
0x13cd   :  { %1652 = vrot.lane.b32.xlu0 %v1650_v37, %s2521_s29  ;;  %v2522_v37 = vmov 0.0|0.0  }
0x13ce   :  { %2339 = vmatprep.subr.bf16.mxu1 %v2522_v37 }
0x143b   :  { %v1575_v38 = vpop.permute.xlu0 %1574 }
0x143d   :  { %v1579_v39 = vpop.permute.xlu1 %1578 }
0x143e   :  { %v1581_v40 = vsel %vm573_vm3, %v1575_v38, %v1579_v39  ;;  %v2340_v38 = vpack.c.bf16 %v1800_v35, %v1799_v34  ;;  %v1802_v39 = vld [vmem:[%s3120_s3 + $0x120] sm:$0xff] }
0x143f   :  { %v1582_v44 = vpack.c.bf16 %v1581_v40, %v1581_v40  ;;  %v1653_v16 = vpop.permute.xlu0 %1652  ;;  %v2343_v40 = vpack.c.bf16 %v1802_v39, %v1801_v36 }
0x1440   :  { %2233 = vmatmul.mubr.msk.bf16.vlgmr.msra.gmra.mrb[28].mxu0 %vm573_vm3, %v1653_v16 }
0x1441   :  { %2225 = vmatmul.mubr.msk.bf16.vlgmr.msra.gmra.mrb[32].mxu1 %vm684_vm5, %v1582_v44  ;;  %2237 = vmatpush3.bf16.msra.mxu0 %v2786_v41 }
0x1442   :  { %2238 = vmatprep.subr.bf16.mxu0 %v2517_v7  ;;  %2244 = vmatprep.mubr.msk.bf16.mxu0 %vm2518_vm2, %v2517_v7 }
0x1443   :  { %2256 = vmatprep.mubr.msk.f32.mxu1 %vm2518_vm2, %v2517_v7  ;;  %2341 = vmatpush3.bf16.msra.mxu1 %v2340_v38 }
0x1444   :  { %2342 = vmatprep.subr.bf16.mxu1 %v2522_v37 }
0x1445   :  { %2239 = vmatpush3.bf16.msra.mxu0 %v2792_v42 }
0x1446   :  { %2240 = vmatprep.subr.bf16.mxu0 %v2517_v7 }
0x1447   :  { %2344 = vmatpush3.bf16.msra.mxu1 %v2343_v40 }
0x1449   :  { %2241 = vmatpush3.bf16.msra.mxu0 %v2799_v43 }
0x144a   :  { %2242 = vmatprep.subr.bf16.mxu0 %v2517_v7 }
0x144d   :  { %2243 = vmatpush3.bf16.msra.mxu0 %v2808_v45 }
0x1513   :  { %v1691_v46 = vpop.f32.mrb[28].mxu0 }
0x1514   :  { %v1620_v41 = vpop.f32.mrb[32].mxu1  ;;  %v1697_v47 = vadd.f32 %v1691_v46, %v2772_v28  ;;  %v2234_v48 = vpop.f32.mrb[29].mxu0 }
0x1515   :  { %v1621_v49 = vadd.f32 %v2840_v62, %v1620_v41  ;;  %v2226_v50 = vpop.f32.mrb[33].mxu1  ;;  %v1694_v51 = vpop.f32.mrb[30].mxu0 }
0x1516   :  { %2467 = vtanh.f32 %v1697_v47  ;;  %v1623_v52 = vpop.f32.mrb[34].mxu1  ;;  %v2235_v42 = vpop.f32.mrb[31].mxu0  ;;  %v1944_v7 = vmul.f32 -1.442695, %v1697_v47  ;;  %v1947_v47 = vld [vmem:[%s3120_s3 + $0x102] ss:$0 sm:$0xff] }
0x1517   :  { %2469 = vtanh.f32 %v1621_v49  ;;  %v2227_v53 = vpop.f32.mrb[35].mxu1  ;;  %v1942_v45 = vmul.f32 -1.442695, %v1621_v49 }
0x1518   :  { %2471 = vpow2.f32 %v1944_v7 }
0x1519   :  { %2473 = vpow2.f32 %v1942_v45 }
0x1520   :  { %v2468_v54 = vpop.eup %2467 }
0x1521   :  { %v2470_v43 = vpop.eup %2469  ;;  %1707 = vrot.lane.b32.xlu0 %v2468_v54, %s2520_s1 }
0x1522   :  { %1635 = vrot.lane.b32.xlu1 %v2470_v43, %s2520_s1  ;;  %v2472_v28 = vpop.eup %2471 }
0x1523   :  { %v2474_v55 = vpop.eup %2473  ;;  %v1701_v18 = vadd.f32 1.0, %v2472_v28 }
0x1524   :  { %v1629_v56 = vadd.f32 1.0, %v2474_v55 }
0x1525   :  { %2475 = vrcp.f32 %v1701_v18 }
0x1526   :  { %2477 = vrcp.f32 %v1629_v56 }
0x152f   :  { %v2476_v57 = vpop.eup %2475 }
0x1530   :  { %v2478_v59 = vpop.eup %2477  ;;  %v1705_v0 = vmul.f32 %v2476_v57, %v3044_v27 }
0x1531   :  { %v1633_v13 = vmul.f32 %v2478_v59, %v3048_v30 }
0x1593   :  { %v1708_v58 = vpop.permute.xlu0 %1707 }
0x1594   :  { %v1636_v60 = vpop.permute.xlu1 %1635  ;;  %v1710_v61 = vmul.f32 %v2476_v57, %v1708_v58 }
0x1595   :  { %v1638_v63 = vmul.f32 %v2478_v59, %v1636_v60 }
0x1596   :  { %1712 = vrot.lane.b32.xlu0 %v1710_v61, %s2521_s29 }
0x1597   :  { %1640 = vrot.lane.b32.xlu1 %v1638_v63, %s2521_s29 }
0x1608   :  { %v1713_v1 = vpop.permute.xlu0 %1712 }
0x1609   :  { %v1641_v2 = vpop.permute.xlu1 %1640  ;;  %v1715_v3 = vadd.f32 %v1713_v1, %v1705_v0 }
0x160a   :  { %v1643_v4 = vadd.f32 %v1641_v2, %v1633_v13 }
0x160b   :  { %2479 = vtanh.f32 %v1715_v3 }
0x160c   :  { %2481 = vtanh.f32 %v1643_v4 }
0x1615   :  { %v2480_v5 = vpop.eup %2479 }
0x1616   :  { %v2482_v6 = vpop.eup %2481  ;;  %1718 = vrot.lane.b32.xlu0 %v2480_v5, %s2520_s1 }
0x1617   :  { %1646 = vrot.lane.b32.xlu1 %v2482_v6, %s2520_s1 }
0x1688   :  { %v1719_v8 = vpop.permute.xlu0 %1718 }
0x1689   :  { %v1647_v22 = vpop.permute.xlu1 %1646  ;;  %v1721_v9 = vmul.f32 %v2476_v57, %v1719_v8 }
0x168a   :  { %v1649_v25 = vmul.f32 %v2478_v59, %v1647_v22 }
0x168b   :  { %1723 = vrot.lane.b32.xlu1 %v1721_v9, %s2521_s29 }
0x168c   :  { %1727 = vrot.lane.b32.xlu0 %v1649_v25, %s2520_s1 }
0x16fd   :  { %v1724_v10 = vpop.permute.xlu1 %1723 }
0x16fe   :  { %v1728_v11 = vpop.permute.xlu0 %1727 }
0x16ff   :  { %v1730_v12 = vsel %vm573_vm3, %v1724_v10, %v1728_v11 }
0x1700   :  { %v1731_v14 = vpack.c.bf16 %v1730_v12, %v1730_v12 }
0x1702   :  { %2245 = vmatmul.mubr.msk.bf16.vlgmr.msra.gmra.mrb[32].mxu0 %vm684_vm5, %v1731_v14 }
0x17d5   :  { %v1769_v24 = vpop.f32.mrb[32].mxu0 }
0x17d6   :  { %v1770_v15 = vadd.f32 %v2840_v62, %v1769_v24  ;;  %v2246_v17 = vpop.f32.mrb[33].mxu0 }
0x17d7   :  { %v1772_v19 = vpop.f32.mrb[34].mxu0 }
0x17d8   :  { %2483 = vtanh.f32 %v1770_v15  ;;  %v2247_v20 = vpop.f32.mrb[35].mxu0  ;;  %v1946_v26 = vmul.f32 -1.442695, %v1770_v15 }
0x17da   :  { %2485 = vpow2.f32 %v1946_v26 }
0x17e2   :  { %v2484_v21 = vpop.eup %2483 }
0x17e3   :  { %1784 = vrot.lane.b32.xlu1 %v2484_v21, %s2520_s1 }
0x17e4   :  { %v2486_v27 = vpop.eup %2485 }
0x17e5   :  { %v1778_v23 = vadd.f32 1.0, %v2486_v27 }
0x17e7   :  { %2487 = vrcp.f32 %v1778_v23 }
0x17f1   :  { %v2488_v29 = vpop.eup %2487 }
0x17f2   :  { %v1782_v32 = vmul.f32 %v2488_v29, %v1643_v4 }
0x1855   :  { %v1785_v30 = vpop.permute.xlu1 %1784 }
0x1856   :  { %v1787_v31 = vmul.f32 %v2488_v29, %v1785_v30 }
0x1858   :  { %1789 = vrot.lane.b32.xlu0 %v1787_v31, %s2521_s29 }
0x18ca   :  { %v1790_v33 = vpop.permute.xlu0 %1789 }
0x18cb   :  { %v1792_v62 = vadd.f32 %v1790_v33, %v1782_v32 }
0x18cd   :  { %2489 = vtanh.f32 %v1792_v62 }
0x18d7   :  { %v2490_v44 = vpop.eup %2489 }
0x18d8   :  { %1795 = vrot.lane.b32.xlu1 %v2490_v44, %s2520_s1 }
0x194a   :  { %v1796_v16 = vpop.permute.xlu1 %1795 }
0x194b   :  { %v1798_v46 = vmul.f32 %v2488_v29, %v1796_v16 }
0x194d   :  { %1809 = vrot.lane.b32.xlu0 %v1798_v46, %s2521_s29 }
0x19bf   :  { %v1810_v41 = vpop.permute.xlu0 %1809 }
0x19c0   :  { %2257 = vmatmul.mubr.msk.f32.vlgmr.msra.gmra.mrb[36].mxu1 %vm573_vm3, %v1810_v41 }
0x1a93   :  { %v1879_v48 = vpop.f32.mrb[36].mxu1 }
0x1a94   :  { %v1880_v49 = vadd.f32 %v1947_v47, %v1879_v48  ;;  %v2258_v50 = vpop.f32.mrb[37].mxu1 }
0x1a96   :  { %1883 = vst [vmem:[#allocation2] sm:$0x3] %v1880_v49 }
0x1a97   :  { %2504 = shalt.err (!%p2501_p4)
}
0x1a98   :  { %s2505_s9 = scalar_lea.hbm %s3122_s5, 32 }
0x1a99   :  { %p2506_p5 = scmp.ne.s32.totalorder %s3122_s5, %s2505_s9  ;;  %p2509_p6 = scmp.lt.u32.totalorder %s2505_s9, %s3122_s5 }
0x1a9b   :  { %p2511_p7 = pnand %p2509_p6, %p2506_p5 }
0x1a9d   :  { %2514 = shalt.err (!%p2511_p7)
}
0x1a9e   :  { %1893 = dma.vmem_to_hbm [thread:$0]  %s1891_s7, 32, %s3122_s5, [#allocation3]  }
0x1a9f   :  { %2515 = dma.done.wait [#allocation3], 32  }
0x1aa0   :  { %2516 = vsyncadd [#allocation3], 4294967264 }
0x1aa1   :  { %1897 = vsyncpa [#allocation3], 1 }

</bundles_post_ra>
